<compile_context>
chip_gen: v5e
topology: v5e:2x2
jax: 0.10.0
libtpu: 0.0.40
codegen_flags: <defaults>
</compile_context>

<pallas_src>
import functools

import numpy as np
import jax
import jax.numpy as jnp
from jax import lax
from jax.experimental import pallas as pl
from jax.experimental.pallas import tpu as pltpu

_LANE = 128


def _cdiv(a, b):
    return -(-a // b)


def _round_up(x, m):
    return _cdiv(x, m) * m


def _vmem_capacity_bytes():
    """Physical VMEM per core (128 MiB v5e/v6e, 64 MiB v7x); conservative fallback."""
    try:
        info = pltpu.get_tpu_info()
        cap = getattr(info, "vmem_capacity_bytes", None)
        if cap:
            return int(cap)
    except Exception:
        pass
    return 64 << 20


def _vmem_block_bytes(block_shape, dtype):
    """Rough VMEM footprint of one pipelined block in Mosaic's tiled layout."""
    itemsize = np.dtype(dtype).itemsize
    packing = max(1, 4 // itemsize)
    dims = list(block_shape)
    if len(dims) >= 1:
        dims[-1] = _round_up(dims[-1], _LANE)
    if len(dims) >= 2:
        dims[-2] = _round_up(dims[-2], 8 * packing)
    n = 1
    for d in dims:
        n *= int(d)
    return n * itemsize


def _pick_tile(OH, OW, O_pad, K_tot, vmem_cap):
    """Output rows per tile (TOH) and tile count T; OH is padded up to T*TOH."""
    # Rough per-output-row VMEM cost: f32 dot result + bf16 LHS + bf16 output row.
    row_cost = O_pad * 4 + _round_up(K_tot, _LANE) * 2 + O_pad * 2
    max_rows = (vmem_cap // 24) // max(row_cost, 1)          # scales with VMEM & O_pad
    max_rows = int(min(8192, max(256, max_rows)))
    toh = max(1, min(OH, max_rows // max(OW, 1)))
    t = _cdiv(OH, toh)
    toh = _cdiv(OH, t)                                       # balance -> minimal padding
    return toh, t


# ----------------------------------------------------------------------------
# Pallas kernel: fused im2col + single K-packed GEMM + bias for one tile
# ----------------------------------------------------------------------------
def _make_conv_kernel(KH, KW, TOH, OW, sh, sw, C, O_pad):
    taps = [(kh, kw) for kh in range(KH) for kw in range(KW)]

    def kernel(x_ref, w_ref, b_ref, o_ref):
        # x_ref : (1, 1, WIN_H, Wp, C)  bf16  -- halo row-window for this OH tile
        # w_ref : (KH*KW*C, O_pad)      bf16  -- im2col-packed weight (K on contraction)
        # b_ref : (1, O_pad)            f32
        # o_ref : (1, TOH, OW, O_pad)   bf16  -- lane-dense NHWC output tile
        pieces = []
        for kh, kw in taps:                       # static, fully unrolled (KH*KW taps)
            rows = pl.ds(kh, TOH) if sh == 1 else pl.ds(kh, TOH, stride=sh)
            cols = pl.ds(kw, OW) if sw == 1 else pl.ds(kw, OW, stride=sw)
            pieces.append(x_ref[0, 0, rows, cols, :])          # (TOH, OW, C) bf16
        # One lane-axis concat per tile -> (TOH*OW, KH*KW*C) LHS; ONE MXU dot with
        # K = KH*KW*C (instead of KH*KW dots with K = C) and no VMEM accumulator.
        lhs = jnp.concatenate(pieces, axis=-1).reshape(TOH * OW, KH * KW * C)
        out = jnp.dot(lhs, w_ref[...], preferred_element_type=jnp.float32)
        out = out + b_ref[...]                                  # f32 bias add
        o_ref[...] = out.reshape(1, TOH, OW, O_pad).astype(o_ref.dtype)

    return kernel


# ----------------------------------------------------------------------------
# Conv2d forward built on the fused Pallas kernel
# ----------------------------------------------------------------------------
def conv2d_pallas(x, weight_oihw, bias, *, stride=(1, 1), padding=(1, 1),
                  input_format="NCHW", out_format="NCHW", out_dtype=jnp.float32):
    """Conv2d (groups=1, dilation=1). OIHW weight; NCHW or NHWC activations."""
    # TODO(synk): dilation != 1 and groups != 1 are not implemented.
    if isinstance(stride, int):
        stride = (stride, stride)
    if isinstance(padding, int):
        padding = (padding, padding)
    sh, sw = stride
    ph, pw = padding

    if input_format == "NCHW":
        N, C, H, W = x.shape
        x_nhwc = jnp.transpose(x, (0, 2, 3, 1))
    else:  # "NHWC": avoids the wrapper-side transpose entirely
        N, H, W, C = x.shape
        x_nhwc = x
    O, Cw, KH, KW = weight_oihw.shape
    assert C == Cw, "input channels must match weight"

    OH = (H + 2 * ph - KH) // sh + 1
    OW = (W + 2 * pw - KW) // sw + 1
    assert OH >= 1 and OW >= 1
    Wp = W + 2 * pw
    O_pad = _round_up(O, _LANE)
    K_tot = KH * KW * C

    vmem_cap = _vmem_capacity_bytes()
    TOH, T = _pick_tile(OH, OW, O_pad, K_tot, vmem_cap)
    OH_pad = TOH * T
    WIN_H = (TOH - 1) * sh + KH                 # rows one tile needs (incl. halo)
    Hp_need = (OH_pad - 1) * sh + KH            # rows the last tile reaches into

    # bf16 operands halve HBM bytes and hit the MXU's native path; zero spatial pad
    # also covers the (possibly) padded last OH tile, so no masking is needed.
    x_nhwc = x_nhwc.astype(jnp.bfloat16)
    pad_bottom = max(0, Hp_need - H - ph)
    x_pad = jnp.pad(x_nhwc, ((0, 0), (ph, pad_bottom), (pw, pw), (0, 0)))

    # Halo row-window stack (N, T, WIN_H, Wp, C): a plain block-indexed BlockSpec can
    # now pipeline exactly the rows each tile needs (small VMEM on v7x, DMA overlap).
    x_win = jnp.stack(
        [x_pad[:, t * TOH * sh: t * TOH * sh + WIN_H] for t in range(T)], axis=1)

    # Weight OIHW -> (KH*KW*C, O_pad): taps folded into the contraction dim, output
    # channels padded to a full lane width so every store is an unmasked, dense vst.
    w = jnp.transpose(weight_oihw, (2, 3, 1, 0)).reshape(K_tot, O)
    w = jnp.pad(w, ((0, 0), (0, O_pad - O))).astype(jnp.bfloat16)

    if bias is None:
        b_row = jnp.zeros((1, O_pad), jnp.float32)
    else:
        b_row = jnp.pad(bias.astype(jnp.float32), (0, O_pad - O)).reshape(1, O_pad)

    kernel = _make_conv_kernel(KH, KW, TOH, OW, sh, sw, C, O_pad)

    # Generation-aware VMEM budget: double-buffered window/output blocks + resident
    # weight/bias + the in-flight f32 dot result, capped at 3/4 of physical VMEM.
    x_blk = _vmem_block_bytes((1, 1, WIN_H, Wp, C), jnp.bfloat16)
    o_blk = _vmem_block_bytes((1, TOH, OW, O_pad), jnp.bfloat16)
    w_blk = _vmem_block_bytes((K_tot, O_pad), jnp.bfloat16)
    b_blk = _vmem_block_bytes((1, O_pad), jnp.float32)
    inter = TOH * OW * (O_pad * 4 + _round_up(K_tot, _LANE) * 2)
    vmem_bytes = 2 * (x_blk + o_blk + w_blk + b_blk) + inter + (2 << 20)
    vmem_bytes = int(min(max(vmem_bytes, 16 << 20), vmem_cap * 3 // 4))

    flops = int(2 * N * OH * OW * KH * KW * C * O)            # true O, not O_pad
    bytes_accessed = int(x_win.size * 2 + w.size * 2 + b_row.size * 4
                         + N * OH * OW * O * 2)

    out = pl.pallas_call(
        kernel,
        out_shape=jax.ShapeDtypeStruct((N, OH_pad, OW, O_pad), jnp.bfloat16),
        grid=(N, T),
        in_specs=[
            # Per-tile halo window (double-buffered by the pipeline).
            pl.BlockSpec((1, 1, WIN_H, Wp, C), lambda n, t: (n, t, 0, 0, 0)),
            # Grid-invariant weight / bias (a few KiB; stay resident).
            pl.BlockSpec((K_tot, O_pad), lambda n, t: (0, 0)),
            pl.BlockSpec((1, O_pad), lambda n, t: (0, 0)),
        ],
        out_specs=pl.BlockSpec((1, TOH, OW, O_pad), lambda n, t: (n, t, 0, 0)),
        compiler_params=pltpu.CompilerParams(
            # No cross-grid accumulation -> both axes fully independent, so v7x's
            # two TensorCores can split OH tiles even when N == 1.
            dimension_semantics=("parallel", "parallel"),
            vmem_limit_bytes=vmem_bytes),
        cost_estimate=pl.CostEstimate(flops=flops, transcendentals=0,
                                      bytes_accessed=bytes_accessed),
    )(x_win, w, b_row)

    out = out[:, :OH, :, :O].astype(out_dtype)    # drop OH/lane padding -> NHWC
    if out_format == "NHWC":
        return out
    # NCHW is the PyTorch module's contract; single output-sized transpose.
    return jnp.transpose(out, (0, 3, 1, 2))


_conv2d_pallas_jit = jax.jit(
    conv2d_pallas,
    static_argnames=("stride", "padding", "input_format", "out_format", "out_dtype"))


# ----------------------------------------------------------------------------
# TensorParallelIcShardConv2d: sharding (parameter setup) + Pallas forward
# ----------------------------------------------------------------------------
class TensorParallelIcShardConv2dPallas:
    """JAX/Pallas port of DeepSpeed TensorParallelIcShardConv2d (shard_by_oc=False)."""

    def __init__(self, weight_oihw, bias, rank, world_size,
                 stride=(1, 1), padding=(1, 1), all_reduce_axis_name=None):
        self.rank = rank
        self.world_size = world_size
        self.shard_by_oc = False
        self.stride = tuple(stride) if not isinstance(stride, int) else (stride, stride)
        self.padding = tuple(padding) if not isinstance(padding, int) else (padding, padding)
        self.all_reduce_axis_name = all_reduce_axis_name
        self._shard_weights(weight_oihw, bias)
        self._fwd = functools.partial(
            _conv2d_pallas_jit, stride=self.stride, padding=self.padding,
            out_format="NCHW")

    def _shard_weights(self, weight, bias):
        # Mirrors TensorParallelConv2d.shard_weights, shard_by_oc=False branch.
        total_size = weight.shape[1]          # input channels
        cols_per_rank = [0]
        for i in range(self.world_size - 1, -1, -1):
            cols = total_size // self.world_size
            if i < total_size % self.world_size:
                cols += 1
            cols_per_rank.append(cols_per_rank[-1] + cols)
        lo, hi = cols_per_rank[self.rank], cols_per_rank[self.rank + 1]
        self.ic_lo, self.ic_hi = lo, hi
        self.weight = weight[:, lo:hi]
        self.bias = None if bias is None else bias / float(self.world_size)

    def __call__(self, x_shard_nchw):
        out = self._fwd(x_shard_nchw, self.weight, self.bias)
        if self.world_size > 1:
            if self.all_reduce_axis_name is not None:
                # dist.inference_all_reduce under shard_map/pmap over the TP axis.
                out = lax.psum(out, self.all_reduce_axis_name)
            # else: caller sums the rank-local partials (see the demo below).
            # TODO(synk): in-kernel RDMA ring all-reduce (make_async_remote_copy)
            # to overlap the reduce with the conv epilogue on multi-chip TP.
        return out


# ----------------------------------------------------------------------------
# Demo / self-check
# ----------------------------------------------------------------------------
if __name__ == "__main__":
    key = jax.random.PRNGKey(0)
    k_x, k_w, k_b = jax.random.split(key, 3)

    # Full (unsharded) conv: in_channels=4, out_channels=8, 3x3, stride 1, pad 1.
    N, C_total, H, W = 2, 4, 16, 16
    O, KH, KW = 8, 3, 3
    world_size = 2

    x_full = jax.random.normal(k_x, (N, C_total, H, W), jnp.float32)
    w_full = jax.random.normal(k_w, (O, C_total, KH, KW), jnp.float32) * 0.1
    b_full = jax.random.normal(k_b, (O,), jnp.float32) * 0.1

    # One module per rank; emulate dist.inference_all_reduce by summing the
    # rank-local partial outputs on this single device.
    ranks = [TensorParallelIcShardConv2dPallas(w_full, b_full, rank=r,
                                               world_size=world_size,
                                               stride=(1, 1), padding=(1, 1))
             for r in range(world_size)]
    partials = [tp(x_full[:, tp.ic_lo:tp.ic_hi]) for tp in ranks]
    y = jax.block_until_ready(sum(partials))       # == all-reduced TP output

    # Reference: full (unsharded) conv on bf16-rounded operands with f32 accumulation
    # (matches the kernel's bf16-operand / f32-accumulator numerics).
    xr = x_full.astype(jnp.bfloat16).astype(jnp.float32)
    wr = w_full.astype(jnp.bfloat16).astype(jnp.float32)
    ref = lax.conv_general_dilated(
        xr, wr, window_strides=(1, 1), padding=((1, 1), (1, 1)),
        dimension_numbers=("NCHW", "OIHW", "NCHW"),
        precision=lax.Precision.HIGHEST) + b_full.reshape(1, -1, 1, 1)

    assert y.shape == (N, O, H, W), y.shape
    max_err = float(jnp.max(jnp.abs(y - ref)))
    assert jnp.allclose(y, ref, atol=2e-2, rtol=2e-2), max_err

    print("KERNEL_OK")
</pallas_src>

<mosaic_0001>
module attributes {stable_mosaic.version = 11 : i64} {
  func.func @kernel(%arg0: i32, %arg1: i32, %arg2: memref<1x1x18x18x2xbf16, #tpu.memory_space<vmem>>, %arg3: memref<18x128xbf16, #tpu.memory_space<vmem>>, %arg4: memref<1x128xf32, #tpu.memory_space<vmem>>, %arg5: memref<1x16x16x128xbf16, #tpu.memory_space<vmem>>) attributes {dimension_semantics = [#tpu.dimension_semantics<parallel>, #tpu.dimension_semantics<parallel>], iteration_bounds = array<i64: 2, 1>, scalar_prefetch = 0 : i64, scratch_operands = 0 : i64, tpu.core_type = #tpu.core_type<tc>, window_params = [{transform_indices = @transform_0, window_bounds = array<i64: 1, 1, 18, 18, 2>}, {pipeline_mode = #tpu.pipeline_mode<synchronous>, transform_indices = @transform_1, window_bounds = array<i64: 18, 128>}, {pipeline_mode = #tpu.pipeline_mode<synchronous>, transform_indices = @transform_2, window_bounds = array<i64: 1, 128>}, {transform_indices = @transform_3, window_bounds = array<i64: 1, 16, 16, 128>}]} {
    %c0 = arith.constant 0 : index
    %c0_0 = arith.constant 0 : index
    %c0_1 = arith.constant 0 : index
    %c0_2 = arith.constant 0 : index
    %c0_3 = arith.constant 0 : index
    %0 = vector.load %arg2[%c0, %c0_0, %c0_1, %c0_2, %c0_3] : memref<1x1x18x18x2xbf16, #tpu.memory_space<vmem>>, vector<1x1x16x16x2xbf16>
    %1 = vector.shape_cast %0 : vector<1x1x16x16x2xbf16> to vector<16x16x2xbf16>
    %c0_4 = arith.constant 0 : index
    %c0_5 = arith.constant 0 : index
    %c0_6 = arith.constant 0 : index
    %c1 = arith.constant 1 : index
    %c0_7 = arith.constant 0 : index
    %2 = vector.load %arg2[%c0_4, %c0_5, %c0_6, %c1, %c0_7] : memref<1x1x18x18x2xbf16, #tpu.memory_space<vmem>>, vector<1x1x16x16x2xbf16>
    %3 = vector.shape_cast %2 : vector<1x1x16x16x2xbf16> to vector<16x16x2xbf16>
    %c0_8 = arith.constant 0 : index
    %c0_9 = arith.constant 0 : index
    %c0_10 = arith.constant 0 : index
    %c2 = arith.constant 2 : index
    %c0_11 = arith.constant 0 : index
    %4 = vector.load %arg2[%c0_8, %c0_9, %c0_10, %c2, %c0_11] : memref<1x1x18x18x2xbf16, #tpu.memory_space<vmem>>, vector<1x1x16x16x2xbf16>
    %5 = vector.shape_cast %4 : vector<1x1x16x16x2xbf16> to vector<16x16x2xbf16>
    %c0_12 = arith.constant 0 : index
    %c0_13 = arith.constant 0 : index
    %c1_14 = arith.constant 1 : index
    %c0_15 = arith.constant 0 : index
    %c0_16 = arith.constant 0 : index
    %6 = vector.load %arg2[%c0_12, %c0_13, %c1_14, %c0_15, %c0_16] : memref<1x1x18x18x2xbf16, #tpu.memory_space<vmem>>, vector<1x1x16x16x2xbf16>
    %7 = vector.shape_cast %6 : vector<1x1x16x16x2xbf16> to vector<16x16x2xbf16>
    %c0_17 = arith.constant 0 : index
    %c0_18 = arith.constant 0 : index
    %c1_19 = arith.constant 1 : index
    %c1_20 = arith.constant 1 : index
    %c0_21 = arith.constant 0 : index
    %8 = vector.load %arg2[%c0_17, %c0_18, %c1_19, %c1_20, %c0_21] : memref<1x1x18x18x2xbf16, #tpu.memory_space<vmem>>, vector<1x1x16x16x2xbf16>
    %9 = vector.shape_cast %8 : vector<1x1x16x16x2xbf16> to vector<16x16x2xbf16>
    %c0_22 = arith.constant 0 : index
    %c0_23 = arith.constant 0 : index
    %c1_24 = arith.constant 1 : index
    %c2_25 = arith.constant 2 : index
    %c0_26 = arith.constant 0 : index
    %10 = vector.load %arg2[%c0_22, %c0_23, %c1_24, %c2_25, %c0_26] : memref<1x1x18x18x2xbf16, #tpu.memory_space<vmem>>, vector<1x1x16x16x2xbf16>
    %11 = vector.shape_cast %10 : vector<1x1x16x16x2xbf16> to vector<16x16x2xbf16>
    %c0_27 = arith.constant 0 : index
    %c0_28 = arith.constant 0 : index
    %c2_29 = arith.constant 2 : index
    %c0_30 = arith.constant 0 : index
    %c0_31 = arith.constant 0 : index
    %12 = vector.load %arg2[%c0_27, %c0_28, %c2_29, %c0_30, %c0_31] : memref<1x1x18x18x2xbf16, #tpu.memory_space<vmem>>, vector<1x1x16x16x2xbf16>
    %13 = vector.shape_cast %12 : vector<1x1x16x16x2xbf16> to vector<16x16x2xbf16>
    %c0_32 = arith.constant 0 : index
    %c0_33 = arith.constant 0 : index
    %c2_34 = arith.constant 2 : index
    %c1_35 = arith.constant 1 : index
    %c0_36 = arith.constant 0 : index
    %14 = vector.load %arg2[%c0_32, %c0_33, %c2_34, %c1_35, %c0_36] : memref<1x1x18x18x2xbf16, #tpu.memory_space<vmem>>, vector<1x1x16x16x2xbf16>
    %15 = vector.shape_cast %14 : vector<1x1x16x16x2xbf16> to vector<16x16x2xbf16>
    %c0_37 = arith.constant 0 : index
    %c0_38 = arith.constant 0 : index
    %c2_39 = arith.constant 2 : index
    %c2_40 = arith.constant 2 : index
    %c0_41 = arith.constant 0 : index
    %16 = vector.load %arg2[%c0_37, %c0_38, %c2_39, %c2_40, %c0_41] : memref<1x1x18x18x2xbf16, #tpu.memory_space<vmem>>, vector<1x1x16x16x2xbf16>
    %17 = vector.shape_cast %16 : vector<1x1x16x16x2xbf16> to vector<16x16x2xbf16>
    %18 = tpu.concatenate %1, %3, %5, %7, %9, %11, %13, %15, %17 in 2 : vector<16x16x2xbf16>, vector<16x16x2xbf16>, vector<16x16x2xbf16>, vector<16x16x2xbf16>, vector<16x16x2xbf16>, vector<16x16x2xbf16>, vector<16x16x2xbf16>, vector<16x16x2xbf16>, vector<16x16x2xbf16> -> vector<16x16x18xbf16>
    %19 = vector.shape_cast %18 : vector<16x16x18xbf16> to vector<256x18xbf16>
    %c0_42 = arith.constant 0 : index
    %c0_43 = arith.constant 0 : index
    %20 = vector.load %arg3[%c0_42, %c0_43] : memref<18x128xbf16, #tpu.memory_space<vmem>>, vector<18x128xbf16>
    %cst = arith.constant dense<0.000000e+00> : vector<256x128xf32>
    %21 = tpu.matmul %19, %20, %cst {dimension_numbers = #tpu.dot_dimension_numbers<[1], [0], [0], [1], [0, 0, 1, 1], [], []>} : vector<256x18xbf16>, vector<18x128xbf16>, vector<256x128xf32> -> vector<256x128xf32>
    %c0_44 = arith.constant 0 : index
    %c0_45 = arith.constant 0 : index
    %22 = vector.load %arg4[%c0_44, %c0_45] : memref<1x128xf32, #tpu.memory_space<vmem>>, vector<1x128xf32>
    %23 = vector.broadcast %22 : vector<1x128xf32> to vector<256x128xf32>
    %24 = arith.addf %21, %23 : vector<256x128xf32>
    %25 = vector.shape_cast %24 : vector<256x128xf32> to vector<1x16x16x128xf32>
    %26 = arith.truncf %25 : vector<1x16x16x128xf32> to vector<1x16x16x128xbf16>
    %c0_46 = arith.constant 0 : index
    %c0_47 = arith.constant 0 : index
    %c0_48 = arith.constant 0 : index
    %c0_49 = arith.constant 0 : index
    %27 = vector.load %arg5[%c0_46, %c0_47, %c0_48, %c0_49] : memref<1x16x16x128xbf16, #tpu.memory_space<vmem>>, vector<1x16x16x128xbf16>
    tpu.vector_store %arg5[%c0_46, %c0_47, %c0_48, %c0_49], %26 {strides = array<i32>} : memref<1x16x16x128xbf16, #tpu.memory_space<vmem>>, vector<1x16x16x128xbf16>,
    return
  }
  func.func @transform_0(%arg0: i32, %arg1: i32) -> (i32, i32, i32, i32, i32) {
    %c0_i32 = arith.constant 0 : i32
    %c0_i32_0 = arith.constant 0 : i32
    %c0_i32_1 = arith.constant 0 : i32
    %c0_i32_2 = arith.constant 0 : i32
    return %arg0, %arg1, %c0_i32, %c0_i32_0, %c0_i32_1 : i32, i32, i32, i32, i32
  }
  func.func @transform_1(%arg0: i32, %arg1: i32) -> (i32, i32) {
    %c0_i32 = arith.constant 0 : i32
    %c0_i32_0 = arith.constant 0 : i32
    %c0_i32_1 = arith.constant 0 : i32
    return %c0_i32, %c0_i32_0 : i32, i32
  }
  func.func @transform_2(%arg0: i32, %arg1: i32) -> (i32, i32) {
    %c0_i32 = arith.constant 0 : i32
    %c0_i32_0 = arith.constant 0 : i32
    %c0_i32_1 = arith.constant 0 : i32
    return %c0_i32, %c0_i32_0 : i32, i32
  }
  func.func @transform_3(%arg0: i32, %arg1: i32) -> (i32, i32, i32, i32) {
    %c0_i32 = arith.constant 0 : i32
    %c0_i32_0 = arith.constant 0 : i32
    %c0_i32_1 = arith.constant 0 : i32
    return %arg0, %arg1, %c0_i32, %c0_i32_0 : i32, i32, i32, i32
  }
}

</mosaic_0001>

<bundles_post_ra>
// kernel: conv2d_pallas.1
= control target key start
LH: loop header
LB: loop body
LE: loop exit
PB: predicated region body
PF: predicated region fallthrough
CT: control target
= control target key end

     0   :  { %s3092_s12 = smov 0   ;;  %s3094_s13 = smov 0   ;;  %s4310_s0 = inlined_call_operand.vmem [shape: bf16[2,1,18,18,2], index: 0, kind: input, shape index: {}]   ;;  %s4311_s1 = inlined_call_operand.vmem [shape: bf16[18,128], index: 1, kind: input, shape index: {}]   ;;  %s4312_s2 = inlined_call_operand.vmem [shape: f32[1,128], index: 2, kind: input, shape index: {}]   ;;  %s4313_s3 = inlined_call_operand.vmem [shape: bf16[2,16,16,128], index: 3, kind: output, shape index: {}]  }
   0x1   :  { %s3096_s14 = smov 0  }
   0x2 LB: > { %s25_s15 = sadd.s32 1, %s3058_s13  ;;  %p2481_p0 = scmp.ge.s32.totalorder %s3062_s14, 1  ;;  %s3062_s14 = sphi %s3096_s14, %s13_s14   ;;  %s3058_s13 = sphi %s3094_s13, %s4326_s13   ;;  %s3054_s12 = sphi %s3092_s12, %s4325_s12  }
   0x3   : > { %p27_p1 = scmp.ge.s32.totalorder %s25_s15, 2  ;;  %p157_p2 = scmp.lt.s32.totalorder %s3062_s14, 3 }
   0x5   : > { %s4328_s15 = smov (%p27_p1, %s25_s15), 0  ;;  %p158_p3 = pnand %p2481_p0, %p157_p2 }
   0x7   : > { %161 = sbr.rel (%p158_p3) target bundleno = 621 (0x26d), region = 32 }
   0xc   : > { %p190_p4 = scmp.lt.s32.totalorder %s3054_s12, 1  ;;  %vm533_vm0 = vsmask.f32 7424  ;;  %s3064_s20 = smov 2   ;;  %vm806_vm1 = vcmask 1046528   ;;  %vm1911_vm2 = vcmask 15360  }
   0xd   : > { %s3065_s21 = smov 4   ;;  %s3066_s22 = smov 6   ;;  %vm1944_vm3 = vcmask 31744   ;;  %vm1977_vm4 = vcmask 48128   ;;  %vm2224_vm5 = vcmask 1040384   ;;  %vm2010_vm6 = vcmask 64512  }
   0xe   : > { %s4330_s12 = smov (!%p190_p4, %s3054_s12), 1  ;;  %s3067_s23 = smov 8   ;;  %vm2043_vm7 = vcmask 80896   ;;  %vm2076_vm8 = vcmask 97280   ;;  %vm2109_vm9 = vcmask 113664   ;;  %vm2142_vm10 = vcmask 130048  }
   0xf   : > { %s2929_s16 = smul.u32 216, %s4330_s12  ;;  %s3068_s24 = smov 10   ;;  %vm2191_vm11 = vcmask 146432  }
  0x10   : > { %s3069_s25 = smov 14   ;;  %s3070_s26 = smov 12  }
  0x11   : > { %s3116_s19 = scalar_lea.vmem %s4310_s0, %s2929_s16  ;;  %s3071_s27 = smov 16  }
  0x12   : > { %v3119_v0 = vld [vmem:[%s3116_s19 + $0x30] sm:$0xff]   ;;  %v247_v1 = vld [vmem:[%s3116_s19 + $0x38] sm:$0x1]  ;;  %v245_v6 = vld [vmem:[%s3116_s19 + $0x20] sm:$0x1]  ;;  %s2635_s7 = sshll.u32 %s4330_s12, 7 }
  0x13   : > { %v3123_v2 = vld [vmem:[%s3116_s19 + $0x18] sm:$0xff]   ;;  %v505_v3 = vunpack.c.l.b16 %v247_v1  ;;  %v583_v4 = vshrl.u32 %v3119_v0, 16  ;;  %v585_v5 = vshll.u32 %v3119_v0, 16  ;;  %v2638_v8 = vld [vmem:[%s3116_s19] sm:$0xff]   ;;  %v503_v9 = vunpack.c.l.b16 %v245_v6  ;;  %v243_v11 = vld [vmem:[%s3116_s19 + $0x8] sm:$0x1]  ;;  %s4225_s10 = scalar_lea.vmem %s4313_s3, %s2635_s7 }
  0x14   : > { %v559_v7 = vshrl.u32 %v3123_v2, 16  ;;  %v561_v10 = vshll.u32 %v3123_v2, 16  ;;  %v535_v12 = vshrl.u32 %v2638_v8, 16  ;;  %v537_v13 = vshll.u32 %v2638_v8, 16  ;;  %v3133_v14 = vld [vmem:[%s3116_s19 + $0x60] sm:$0xff]   ;;  %v3163_v42 = vld [vmem:[%s3116_s19 + $0x48] sm:$0xff]  }
  0x15   : > { %v3135_v15 = vpack.c.b16 %v505_v3, %v505_v3  ;;  %v587_v16 = vrot.slane %v585_v5, 1  ;;  %v501_v17 = vunpack.c.l.b16 %v243_v11  ;;  %v251_v18 = vld [vmem:[%s3116_s19 + $0x68] sm:$0x1]  ;;  %v631_v19 = vshrl.u32 %v3133_v14, 16  ;;  %v246_v30 = vld [vmem:[%s3116_s19 + $0x2c] sm:$0x1] }
  0x16   : > { %v3139_v20 = vpack.c.b16 %v503_v9, %v503_v9  ;;  %v563_v21 = vrot.slane %v561_v10, 1  ;;  %v539_v22 = vrot.slane %v537_v13, 1  ;;  %v509_v23 = vunpack.c.l.b16 %v251_v18  ;;  %v3142_v24 = vld [vmem:[%s3116_s19 + $0x24] sm:$0xff]   ;;  %v249_v35 = vld [vmem:[%s3116_s19 + $0x50] sm:$0x1]  ;;  %v3175_v50 = vld [vmem:[%s3116_s19 + $0x3c] sm:$0xff]  }
  0x17   : > { %v3145_v25 = vld [vmem:[%s3116_s19 + $0x24] sm:$0xf0]  ;;  %v3147_v26 = vor.u32 %v587_v16, %v583_v4  ;;  %v590_v27 = vshll.u32 %v3135_v15, 16  ;;  %v3150_v28 = vpack.c.b16 %v501_v17, %v501_v17  ;;  %v633_v29 = vshll.u32 %v3133_v14, 16  ;;  %v3178_v51 = vld [vmem:[%s3116_s19 + $0x3c] sm:$0xf0] }
  0x18   : > { %v3154_v31 = vor.u32 %v563_v21, %v559_v7  ;;  %v566_v32 = vshll.u32 %v3139_v20, 16  ;;  %v540_v33 = vor.u32 %v539_v22, %v535_v12  ;;  %v3157_v34 = vpack.c.b16 %v509_v23, %v509_v23  ;;  %v248_v56 = vld [vmem:[%s3116_s19 + $0x44] sm:$0x1]  ;;  %v3188_v57 = vld [vmem:[%s3116_s19 + $0x54] sm:$0xff]   ;;  %v250_v3 = vld [vmem:[%s3116_s19 + $0x5c] sm:$0x1] }
  0x19   : > { %4317 = vst [vmem:[#allocation2_spill] sm:$0xff] %v3147_v26  ;;  %v592_v36 = vrot.slane %v590_v27, 1  ;;  %v542_v37 = vshll.u32 %v3150_v28, 16  ;;  %v635_v38 = vrot.slane %v633_v29, 1  ;;  %v504_v41 = vunpack.c.l.b16 %v246_v30  ;;  %v3191_v58 = vld [vmem:[%s3116_s19 + $0x54] sm:$0xf0] }
  0x1a   : > { %v568_v39 = vrot.slane %v566_v32, 1  ;;  %v638_v40 = vshll.u32 %v3157_v34, 16  ;;  %v507_v46 = vunpack.c.l.b16 %v249_v35  ;;  %v607_v54 = vshrl.u32 %v3163_v42, 16  ;;  %v3202_v4 = vld [vmem:[%s3116_s19 + $0xc] sm:$0xff]   ;;  %v244_v16 = vld [vmem:[%s3116_s19 + $0x14] sm:$0x1] }
  0x1b   : > { %v593_v43 = vsel %vm533_vm0, %v3147_v26, %v592_v36  ;;  %v544_v44 = vrot.slane %v542_v37, 1  ;;  %v3167_v45 = vor.u32 %v635_v38, %v631_v19  ;;  %v3172_v49 = vpack.c.b16 %v504_v41, %v504_v41  ;;  %v3205_v5 = vld [vmem:[%s3116_s19 + $0xc] sm:$0xf0]  ;;  %v3217_v21 = vld [vmem:[%s3116_s19 + $0x84] sm:$0xff]   ;;  %v254_v36 = vld [vmem:[%s3116_s19 + $0x8c] sm:$0x1] }
  0x1c   : > { %734 = vrot.lane.b32.xlu2 %v593_v43, %s3064_s20  ;;  %v569_v47 = vsel %vm533_vm0, %v3154_v31, %v568_v39  ;;  %v640_v48 = vrot.slane %v638_v40, 1  ;;  %v3182_v53 = vpack.c.b16 %v507_v46, %v507_v46  ;;  %v609_v55 = vshll.u32 %v3163_v42, 16  ;;  %v3220_v22 = vld [vmem:[%s3116_s19 + $0x84] sm:$0xf0]  ;;  %v253_v43 = vld [vmem:[%s3116_s19 + $0x80] sm:$0x1] }
  0x1d   : > { %4318 = vst [vmem:[#allocation3_spill] sm:$0xff] %v3167_v45  ;;  %730 = vrot.lane.b32.xlu1 %v569_v47, %s3064_s20  ;;  %v545_v52 = vsel %vm533_vm0, %v540_v33, %v544_v44  ;;  %v571_v60 = vshrl.u32 %v3142_v24, 16  ;;  %v573_v61 = vshll.u32 %v3142_v24, 16  ;;  %v578_v62 = vshll.u32 %v3172_v49, 16 }
  0x1e   : > { %726 = vrot.lane.b32.xlu0 %v545_v52, %s3064_s20  ;;  %v641_v59 = vsel %vm533_vm0, %v3167_v45, %v640_v48  ;;  %v611_v63 = vrot.slane %v609_v55, 1  ;;  %v614_v1 = vshll.u32 %v3182_v53, 16  ;;  %v506_v8 = vunpack.c.l.b16 %v248_v56  ;;  %v3241_v56 = vld [vmem:[%s3116_s19 + $0x78] sm:$0xff]   ;;  %v2972_v45 = vld [vmem:[%s3116_s19 + $0x24] sm:$0xe] }
  0x1f   : > { %v575_v6 = vrot.slane %v573_v61, 1  ;;  %v580_v7 = vrot.slane %v578_v62, 1  ;;  %v508_v13 = vunpack.c.l.b16 %v250_v3  ;;  %v595_v18 = vshrl.u32 %v3175_v50, 16  ;;  %v252_v3 = vld [vmem:[%s3116_s19 + $0x74] sm:$0x1] }
  0x20   : > { %v3207_v9 = vor.u32 %v611_v63, %v607_v54  ;;  %v616_v10 = vrot.slane %v614_v1, 1  ;;  %v3209_v12 = vpack.c.b16 %v506_v8, %v506_v8  ;;  %v597_v19 = vshll.u32 %v3175_v50, 16  ;;  %v3247_v63 = vld [vmem:[%s3116_s19 + $0x6c] sm:$0xff]  }
  0x21   : > { %v576_v11 = vor.u32 %v575_v6, %v571_v60  ;;  %v3225_v29 = vpack.c.b16 %v508_v13, %v508_v13  ;;  %v619_v32 = vshrl.u32 %v3188_v57, 16  ;;  %v621_v33 = vshll.u32 %v3188_v57, 16  ;;  %v3250_v1 = vld [vmem:[%s3116_s19 + $0x6c] sm:$0xf0] }
  0x22   : > { %v617_v17 = vsel %vm533_vm0, %v3207_v9, %v616_v10  ;;  %v602_v27 = vshll.u32 %v3209_v12, 16  ;;  %v599_v30 = vrot.slane %v597_v19, 1  ;;  %v502_v35 = vunpack.c.l.b16 %v244_v16 }
  0x23   : > { %v581_v23 = vsel %vm533_vm0, %v576_v11, %v580_v7  ;;  %v626_v38 = vshll.u32 %v3225_v29, 16  ;;  %v623_v40 = vrot.slane %v621_v33, 1  ;;  %v547_v46 = vshrl.u32 %v3202_v4, 16 }
  0x24   : > { %742 = vrot.lane.b32.xlu2 %v641_v59, %s3064_s20  ;;  %v604_v37 = vrot.slane %v602_v27, 1  ;;  %v600_v39 = vor.u32 %v599_v30, %v595_v18  ;;  %v3233_v41 = vpack.c.b16 %v502_v35, %v502_v35  ;;  %v549_v47 = vshll.u32 %v3202_v4, 16  ;;  %v257_v18 = vld [vmem:[%s3116_s19 + $0xb0] sm:$0x1]  ;;  %v3264_v27 = vld [vmem:[%s3116_s19 + $0xa8] sm:$0xff]  }
  0x25   : > { %732 = vrot.lane.b32.xlu1 %v581_v23, %s3064_s20  ;;  %v628_v44 = vrot.slane %v626_v38, 1  ;;  %v512_v48 = vunpack.c.l.b16 %v254_v36  ;;  %v624_v54 = vor.u32 %v623_v40, %v619_v32  ;;  %v511_v61 = vunpack.c.l.b16 %v253_v43  ;;  %v3275_v40 = vld [vmem:[%s3116_s19 + $0x9c] sm:$0xf0] }
  0x26   : > { %738 = vrot.lane.b32.xlu0 %v617_v17, %s3064_s20  ;;  %v605_v52 = vsel %vm533_vm0, %v600_v39, %v604_v37  ;;  %v554_v55 = vshll.u32 %v3233_v41, 16  ;;  %v551_v59 = vrot.slane %v549_v47, 1  ;;  %v655_v62 = vshrl.u32 %v3241_v56, 16  ;;  %v3272_v39 = vld [vmem:[%s3116_s19 + $0x9c] sm:$0xff]  }
  0x27   : > { %v3243_v60 = vpack.c.b16 %v512_v48, %v512_v48  ;;  %v629_v6 = vsel %vm533_vm0, %v624_v54, %v628_v44  ;;  %v667_v8 = vshrl.u32 %v3217_v21, 16  ;;  %v669_v10 = vshll.u32 %v3217_v21, 16  ;;  %v256_v48 = vld [vmem:[%s3116_s19 + $0xa4] sm:$0x1] }
  0x28   : > { %v556_v7 = vrot.slane %v554_v55, 1  ;;  %v552_v11 = vor.u32 %v551_v59, %v547_v46  ;;  %v3258_v16 = vpack.c.b16 %v511_v61, %v511_v61  ;;  %v657_v17 = vshll.u32 %v3241_v56, 16  ;;  %v255_v61 = vld [vmem:[%s3116_s19 + $0x98] sm:$0x1] }
  0x29   : > { %v674_v13 = vshll.u32 %v3243_v60, 16  ;;  %v671_v19 = vrot.slane %v669_v10, 1  ;;  %v510_v23 = vunpack.c.l.b16 %v252_v3  ;;  %v515_v38 = vunpack.c.l.b16 %v257_v18 }
  0x2a   : > { %v557_v30 = vsel %vm533_vm0, %v552_v11, %v556_v7  ;;  %v659_v33 = vrot.slane %v657_v17, 1  ;;  %v662_v35 = vshll.u32 %v3258_v16, 16  ;;  %v703_v46 = vshrl.u32 %v3264_v27, 16  ;;  %v3292_v7 = vld [vmem:[%s3116_s19 + $0x90] sm:$0xff]  }
  0x2b   : > { %v676_v32 = vrot.slane %v674_v13, 1  ;;  %v672_v36 = vor.u32 %v671_v19, %v667_v8  ;;  %v3269_v37 = vpack.c.b16 %v510_v23, %v510_v23  ;;  %v705_v47 = vshll.u32 %v3264_v27, 16  ;;  %v2969_v13 = vld [vmem:[%s3116_s19 + $0xc] sm:$0xe] }
  0x2c   : > { %736 = vrot.lane.b32.xlu2 %v605_v52, %s3064_s20  ;;  %v3277_v43 = vor.u32 %v659_v33, %v655_v62  ;;  %v664_v44 = vrot.slane %v662_v35, 1  ;;  %v643_v54 = vshrl.u32 %v3247_v63, 16  ;;  %v645_v55 = vshll.u32 %v3247_v63, 16 }
  0x2d   : > { %740 = vrot.lane.b32.xlu1 %v629_v6, %s3064_s20  ;;  %v677_v52 = vsel %vm533_vm0, %v672_v36, %v676_v32  ;;  %v650_v59 = vshll.u32 %v3269_v37, 16  ;;  %v3289_v3 = vpack.c.b16 %v515_v38, %v515_v38  ;;  %v707_v6 = vrot.slane %v705_v47, 1 }
  0x2e   : > { %728 = vrot.lane.b32.xlu0 %v557_v30, %s3064_s20  ;;  %v665_v62 = vsel %vm533_vm0, %v3277_v43, %v664_v44  ;;  %v647_v8 = vrot.slane %v645_v55, 1  ;;  %v514_v11 = vunpack.c.l.b16 %v256_v48  ;;  %v513_v19 = vunpack.c.l.b16 %v255_v61  ;;  %v3311_v48 = vld [vmem:[%s3116_s19 + $0xb4] sm:$0xff]   ;;  %v2837_v61 = vld [vmem:[%s3116_s19] sm:$0xe] }
  0x2f   : > { %v652_v10 = vrot.slane %v650_v59, 1  ;;  %v3296_v17 = vor.u32 %v707_v6, %v703_v46  ;;  %v710_v18 = vshll.u32 %v3289_v3, 16  ;;  %v681_v32 = vshll.u32 %v3292_v7, 16  ;;  %v2836_v59 = vld [vmem:[%s3116_s19] sm:$0xf0] }
  0x30   : > { %v648_v23 = vor.u32 %v647_v8, %v643_v54  ;;  %v3300_v30 = vpack.c.b16 %v514_v11, %v514_v11  ;;  %v3303_v35 = vpack.c.b16 %v513_v19, %v513_v19  ;;  %v679_v36 = vshrl.u32 %v3292_v7, 16  ;;  %v258_v11 = vld [vmem:[%s3116_s19 + $0xbc] sm:$0x1] }
  0x31   : > { %v712_v33 = vrot.slane %v710_v18, 1  ;;  %v691_v44 = vshrl.u32 %v3272_v39, 16  ;;  %v693_v46 = vshll.u32 %v3272_v39, 16  ;;  %v683_v54 = vrot.slane %v681_v32, 1 }
  0x32   : > { %v653_v38 = vsel %vm533_vm0, %v648_v23, %v652_v10  ;;  %v698_v47 = vshll.u32 %v3300_v30, 16  ;;  %v686_v55 = vshll.u32 %v3303_v35, 16  ;;  %v2970_v10 = vor.u32 %v2969_v13, %v3205_v5 }
  0x33   : > { %v695_v6 = vrot.slane %v693_v46, 1  ;;  %v3324_v18 = vor.u32 %v683_v54, %v679_v36  ;;  %v2838_v32 = vor.u32 %v2837_v61, %v2836_v59  ;;  %v516_v26 = vunpack.c.l.b16 %v258_v11 }
  0x34   : > { %748 = vrot.lane.b32.xlu2 %v677_v52, %s3064_s20  ;;  %v3314_v52 = vld [vmem:[%s3116_s19 + $0xb4] sm:$0xf0]  ;;  %v700_v8 = vrot.slane %v698_v47, 1  ;;  %v688_v19 = vrot.slane %v686_v55, 1  ;;  %v810_v5 = vrot.slane %v2970_v10, 1  ;;  %v808_v13 = vrot.slane %v3150_v28, 1 }
  0x35   : > { %746 = vrot.lane.b32.xlu1 %v665_v62, %s3064_s20  ;;  %v713_v62 = vsel %vm533_vm0, %v3296_v17, %v712_v33  ;;  %4319 = vst [vmem:[#allocation4_spill] sm:$0xff] %v3324_v18  ;;  %v696_v23 = vor.u32 %v695_v6, %v691_v44  ;;  %v3334_v36 = vpack.c.b16 %v516_v26, %v516_v26  ;;  %v2842_v44 = vld [vmem:[%s3116_s19 + $0x30] sm:$0xf0]  ;;  %v807_v47 = vrot.slane %v2838_v32, 1  ;;  %v2840_v26 = vld [vmem:[%s3116_s19 + $0x18] sm:$0xe] }
  0x36   : > { %744 = vrot.lane.b32.xlu0 %v653_v38, %s3064_s20  ;;  %v811_v38 = vrot.slane %v3233_v41, 1  ;;  %v689_v46 = vsel %vm533_vm0, %v3324_v18, %v688_v19  ;;  %v2843_v41 = vld [vmem:[%s3116_s19 + $0x30] sm:$0xe]  ;;  %v715_v54 = vshrl.u32 %v3311_v48, 16  ;;  %v717_v55 = vshll.u32 %v3311_v48, 16 }
  0x37   : > { %v701_v33 = vsel %vm533_vm0, %v696_v23, %v700_v8  ;;  %v722_v59 = vshll.u32 %v3334_v36, 16  ;;  %v2844_v6 = vor.u32 %v2843_v41, %v2842_v44  ;;  %v2839_v8 = vld [vmem:[%s3116_s19 + $0x18] sm:$0xf0]  ;;  %v2975_v10 = vld [vmem:[%s3116_s19 + $0x54] sm:$0xe]  ;;  %v809_v11 = vsel %vm806_vm1, %v807_v47, %v808_v13 }
  0x38   : > { %v812_v61 = vsel %vm806_vm1, %v810_v5, %v811_v38  ;;  %v2973_v23 = vor.u32 %v2972_v45, %v3145_v25  ;;  %v820_v32 = vrot.slane %v3135_v15, 1  ;;  %v2978_v5 = vld [vmem:[%s3116_s19 + $0x3c] sm:$0xe]  ;;  %v817_v13 = vrot.slane %v3172_v49, 1  ;;  %v2845_v45 = vld [vmem:[%s3116_s19 + $0x48] sm:$0xf0] }
  0x39   : > { %v724_v28 = vrot.slane %v722_v59, 1  ;;  %v814_v25 = vrot.slane %v3139_v20, 1  ;;  %v2846_v41 = vld [vmem:[%s3116_s19 + $0x48] sm:$0xe]  ;;  %v2981_v49 = vld [vmem:[%s3116_s19 + $0x6c] sm:$0xe] }
  0x3a   : > { %v816_v44 = vrot.slane %v2973_v23, 1  ;;  %v2847_v59 = vor.u32 %v2846_v41, %v2845_v45  ;;  %v832_v45 = vrot.slane %v3157_v34, 1  ;;  %v2855_v41 = vld [vmem:[%s3116_s19 + $0x90] sm:$0xe] }
  0x3c   : > { %754 = vrot.lane.b32.xlu2 %v713_v62, %s3064_s20  ;;  %v719_v62 = vrot.slane %v717_v55, 1  ;;  %v818_v55 = vsel %vm806_vm1, %v816_v44, %v817_v13 }
  0x3d   : > { %752 = vrot.lane.b32.xlu1 %v701_v33, %s3064_s20  ;;  %v819_v33 = vrot.slane %v2844_v6, 1  ;;  %v2979_v6 = vor.u32 %v2978_v5, %v3178_v51  ;;  %v2984_v51 = vld [vmem:[%s3116_s19 + $0x9c] sm:$0xe] }
  0x3e   : > { %750 = vrot.lane.b32.xlu0 %v689_v46, %s3064_s20  ;;  %v720_v19 = vor.u32 %v719_v62, %v715_v54  ;;  %v2841_v46 = vor.u32 %v2840_v26, %v2839_v8  ;;  %v2976_v54 = vor.u32 %v2975_v10, %v3191_v58  ;;  %v829_v62 = vrot.slane %v3225_v29, 1  ;;  %v2851_v8 = vld [vmem:[%s3116_s19 + $0x78] sm:$0xf0]  ;;  %v2852_v58 = vld [vmem:[%s3116_s19 + $0x78] sm:$0xe] }
  0x3f   : > { %v821_v15 = vsel %vm806_vm1, %v819_v33, %v820_v32  ;;  %v826_v26 = vrot.slane %v3182_v53, 1  ;;  %v2853_v23 = vor.u32 %v2852_v58, %v2851_v8  ;;  %v2848_v32 = vld [vmem:[%s3116_s19 + $0x60] sm:$0xf0]  ;;  %v2849_v29 = vld [vmem:[%s3116_s19 + $0x60] sm:$0xe]  ;;  %v2982_v33 = vor.u32 %v2981_v49, %v3250_v1  ;;  %v3402_v58 = vld [vmem:[%s3116_s19 + $0xc] sm:$0xff]  }
  0x40   : > { %v725_v38 = vsel %vm533_vm0, %v720_v19, %v724_v28  ;;  %v813_v47 = vrot.slane %v2841_v46, 1  ;;  %v828_v20 = vrot.slane %v2976_v54, 1  ;;  %v825_v28 = vrot.slane %v2847_v59, 1  ;;  %v2854_v1 = vld [vmem:[%s3116_s19 + $0x90] sm:$0xf0] }
  0x41   : > { %v823_v19 = vrot.slane %v3209_v12, 1  ;;  %v838_v53 = vrot.slane %v3258_v16, 1  ;;  %v837_v5 = vrot.slane %v2853_v23, 1  ;;  %v2850_v44 = vor.u32 %v2849_v29, %v2848_v32  ;;  %v2987_v12 = vld [vmem:[%s3116_s19 + $0x84] sm:$0xe] }
  0x42   : > { %v830_v10 = vsel %vm806_vm1, %v828_v20, %v829_v62  ;;  %v834_v13 = vrot.slane %v2982_v33, 1  ;;  %v847_v49 = vrot.slane %v3300_v30, 1  ;;  %v844_v20 = vrot.slane %v3303_v35, 1  ;;  %v2857_v30 = vld [vmem:[%s3116_s19 + $0xa8] sm:$0xf0]  ;;  %v3419_v29 = vld [vmem:[%s3116_s19 + $0x24] sm:$0xff]  }
  0x43   : > { %v831_v16 = vrot.slane %v2850_v44, 1  ;;  %v841_v8 = vrot.slane %v3243_v60, 1  ;;  %v850_v32 = vrot.slane %v3289_v3, 1  ;;  %v3430_v3 = vld [vmem:[%s3116_s19 + $0x54] sm:$0xff]   ;;  %v3438_v33 = vld [vmem:[%s3116_s19 + $0x3c] sm:$0xff]  }
  0x44   : > { %857 = vrot.lane.b32.xlu2 %v812_v61, %s3065_s21  ;;  %v815_v61 = vsel %vm806_vm1, %v813_v47, %v814_v25  ;;  %v835_v25 = vrot.slane %v3269_v37, 1  ;;  %v2985_v47 = vor.u32 %v2984_v51, %v3275_v40  ;;  %v2990_v37 = vld [vmem:[%s3116_s19 + $0xb4] sm:$0xe]  ;;  %v3422_v51 = vld [vmem:[%s3116_s19 + $0x24] sm:$0xf0] }
  0x45   : > { %855 = vrot.lane.b32.xlu1 %v809_v11, %s3065_s21  ;;  %v822_v11 = vrot.slane %v2979_v6, 1  ;;  %v833_v59 = vsel %vm806_vm1, %v831_v16, %v832_v45  ;;  %4320 = vst [vmem:[#allocation5_spill] sm:$0xff] %v3422_v51  ;;  %v3451_v44 = vld [vmem:[%s3116_s19 + $0x6c] sm:$0xf0]  ;;  %v3471_v45 = vld [vmem:[%s3116_s19 + $0x84] sm:$0xf0] }
  0x46   : > { %756 = vrot.lane.b32.xlu0 %v725_v38, %s3064_s20  ;;  %v827_v38 = vsel %vm806_vm1, %v825_v28, %v826_v26  ;;  %v836_v54 = vsel %vm806_vm1, %v834_v13, %v835_v25  ;;  %v846_v34 = vrot.slane %v2985_v47, 1  ;;  %v3405_v28 = vld [vmem:[%s3116_s19 + $0xc] sm:$0xf0]  ;;  %v3462_v13 = vld [vmem:[%s3116_s19 + $0x9c] sm:$0xff]   ;;  %v3468_v25 = vld [vmem:[%s3116_s19 + $0x84] sm:$0xff]  }
  0x47   : > { %v824_v46 = vsel %vm806_vm1, %v822_v11, %v823_v19  ;;  %v853_v19 = vrot.slane %v3334_v36, 1  ;;  %v2517_v16 = vld [vmem:[%s3116_s19 + $0x14] sm:$0x1]  ;;  %v1192_v51 = vshrl.u32 %v3462_v13, 16 }
  0x48   : > { %v848_v62 = vsel %vm806_vm1, %v846_v34, %v847_v49  ;;  %v3482_v47 = vld [vmem:[%s3116_s19 + $0xb4] sm:$0xff]  }
  0x4c   : > { %863 = vrot.lane.b32.xlu2 %v821_v15, %s3065_s21  ;;  %v839_v15 = vsel %vm806_vm1, %v837_v5, %v838_v53  ;;  %v3441_v53 = vld [vmem:[%s3116_s19 + $0x3c] sm:$0xf0]  ;;  %v2501_v5 = vld [vmem:[%s3116_s19 + $0x6c] sm:$0xff]  }
  0x4d   : > { %861 = vrot.lane.b32.xlu1 %v818_v55, %s3065_s21  ;;  %v2856_v55 = vor.u32 %v2855_v41, %v2854_v1  ;;  %v2518_v41 = vld [vmem:[%s3116_s19 + $0x20] sm:$0x1] }
  0x4e   : > { %859 = vrot.lane.b32.xlu0 %v815_v61, %s3065_s21  ;;  %v2988_v61 = vor.u32 %v2987_v12, %v3220_v22  ;;  %v2858_v22 = vld [vmem:[%s3116_s19 + $0xa8] sm:$0xe] }
  0x4f   : > { %v843_v40 = vrot.slane %v2856_v55, 1  ;;  %v2859_v11 = vor.u32 %v2858_v22, %v2857_v30  ;;  %v1016_v55 = vunpack.c.l.b16 %v2518_v41 }
  0x50   : > { %v840_v6 = vrot.slane %v2988_v61, 1 }
  0x51   : > { %v845_v26 = vsel %vm806_vm1, %v843_v40, %v844_v20  ;;  %v849_v23 = vrot.slane %v2859_v11, 1  ;;  %v3497_v61 = vpack.c.b16 %v1016_v55, %v1016_v55  ;;  %v1050_v40 = vshll.u32 %v3402_v58, 16 }
  0x52   : > { %v842_v35 = vsel %vm806_vm1, %v840_v6, %v841_v8  ;;  %v3507_v6 = vld [vmem:[%s3116_s19 + $0xc0] sm:$0xff]   ;;  %v1144_v8 = vshrl.u32 %v2501_v5, 16  ;;  %v1048_v11 = vshrl.u32 %v3402_v58, 16 }
  0x53   : > { %v851_v36 = vsel %vm806_vm1, %v849_v23, %v850_v32  ;;  %v2996_v23 = vld [vmem:[%s3116_s19 + $0x6c] sm:$0xe] }
  0x54   : > { %869 = vrot.lane.b32.xlu2 %v830_v10, %s3065_s21  ;;  %v2991_v10 = vor.u32 %v2990_v37, %v3314_v52  ;;  %v1015_v37 = vunpack.c.l.b16 %v2517_v16  ;;  %v1194_v16 = vshll.u32 %v3462_v13, 16 }
  0x55   : > { %867 = vrot.lane.b32.xlu1 %v827_v38, %s3065_s21  ;;  %v3433_v38 = vld [vmem:[%s3116_s19 + $0x54] sm:$0xf0] }
  0x56   : > { %865 = vrot.lane.b32.xlu0 %v824_v46, %s3065_s21  ;;  %v852_v60 = vrot.slane %v2991_v10, 1  ;;  %v2993_v10 = vld [vmem:[%s3116_s19 + $0x9c] sm:$0xe] }
  0x58   : > { %v854_v52 = vsel %vm806_vm1, %v852_v60, %v853_v19  ;;  %v1052_v60 = vrot.slane %v1050_v40, 1 }
  0x5a   : > { %v1053_v55 = vor.u32 %v1052_v60, %v1048_v11  ;;  %v1196_v60 = vrot.slane %v1194_v16, 1  ;;  %v2593_v16 = vld [vmem:[%s3116_s19 + $0xb0] sm:$0x1] }
  0x5c   : > { %875 = vrot.lane.b32.xlu2 %v839_v15, %s3065_s21 }
  0x5d   : > { %873 = vrot.lane.b32.xlu1 %v836_v54, %s3065_s21  ;;  %v3485_v54 = vld [vmem:[%s3116_s19 + $0xb4] sm:$0xf0] }
  0x5e   : > { %871 = vrot.lane.b32.xlu0 %v833_v59, %s3065_s21  ;;  %v1146_v59 = vshll.u32 %v2501_v5, 16 }
  0x60   : > { %v1148_v30 = vrot.slane %v1146_v59, 1 }
  0x62   : > { %v1149_v32 = vor.u32 %v1148_v30, %v1144_v8 }
  0x64   : > { %881 = vrot.lane.b32.xlu2 %v848_v62, %s3065_s21  ;;  %v3504_v62 = vpack.c.b16 %v1015_v37, %v1015_v37 }
  0x65   : > { %879 = vrot.lane.b32.xlu1 %v845_v26, %s3065_s21  ;;  %v2529_v26 = vld [vmem:[%s3116_s19 + $0xa4] sm:$0x1] }
  0x66   : > { %877 = vrot.lane.b32.xlu0 %v842_v35, %s3065_s21  ;;  %v1067_v35 = vshll.u32 %v3497_v61, 16  ;;  %v1055_v19 = vshll.u32 %v3504_v62, 16 }
  0x68   : > { %v1057_v37 = vrot.slane %v1055_v19, 1 }
  0x6c   : > { %967 = vrot.lane.b32.xlu2 %v3402_v58, %s3066_s22 }
  0x6d   : > { %885 = vrot.lane.b32.xlu1 %v854_v52, %s3065_s21 }
  0x6e   : > { %883 = vrot.lane.b32.xlu0 %v851_v36, %s3065_s21  ;;  %v1027_v36 = vunpack.c.l.b16 %v2529_v26  ;;  %v2997_v26 = vor.u32 %v2996_v23, %v3451_v44 }
  0x70   : > { %v1043_v40 = vpack.c.b16 %v1027_v36, %v1027_v36 }
  0x72   : > { %v1356_v18 = vrot.slane %v1043_v40, 1  ;;  %v1199_v19 = vshll.u32 %v1043_v40, 16  ;;  %v2902_v40 = vld [vmem:[%s3116_s19 + $0xa8] sm:$0xf0] }
  0x74   : > { %973 = vrot.lane.b32.xlu2 %v3119_v0, %s3066_s22  ;;  %v1201_v36 = vrot.slane %v1199_v19, 1 }
  0x75   : > { %971 = vrot.lane.b32.xlu1 %v3419_v29, %s3066_s22 }
  0x76   : > { %v3445_v46 = vpop.permute.xlu2 %734  ;;  %969 = vrot.lane.b32.xlu0 %v3123_v2, %s3066_s22  ;;  %v2992_v2 = vld [vmem:[%s3116_s19 + $0x9c] sm:$0xf0] }
  0x77   : > { %v2994_v8 = vor.u32 %v2993_v10, %v2992_v2  ;;  %v1343_v10 = vrot.slane %v2997_v26, 1  ;;  %v2896_v26 = vld [vmem:[%s3116_s19 + $0x78] sm:$0xf0] }
  0x79   : > { %v1355_v11 = vrot.slane %v2994_v8, 1  ;;  %v2903_v8 = vld [vmem:[%s3116_s19 + $0xa8] sm:$0xe] }
  0x7a   : > { %v2904_v19 = vor.u32 %v2903_v8, %v2902_v40 }
  0x7c   : > { %979 = vrot.lane.b32.xlu2 %v3430_v3, %s3066_s22 }
  0x7d   : > { %977 = vrot.lane.b32.xlu1 %v3163_v42, %s3066_s22  ;;  %v2525_v42 = vld [vmem:[%s3116_s19 + $0x74] sm:$0x1] }
  0x7e   : > { %v3457_v12 = vpop.permute.xlu2 %742  ;;  %975 = vrot.lane.b32.xlu0 %v3438_v33, %s3066_s22  ;;  %v1023_v15 = vunpack.c.l.b16 %v2525_v42  ;;  %v2589_v42 = vld [vmem:[%s3116_s19 + $0x80] sm:$0x1] }
  0x7f   : > { %v1535_v30 = vunpack.c.l.b16 %v2589_v42 }
  0x80   : > { %v3489_v34 = vpack.c.b16 %v1023_v15, %v1023_v15  ;;  %v1069_v15 = vrot.slane %v1067_v35, 1  ;;  %v1058_v35 = vsel %vm533_vm0, %v1053_v55, %v1057_v37  ;;  %v1539_v37 = vunpack.c.l.b16 %v2593_v16  ;;  %v2581_v16 = vld [vmem:[%s3116_s19 + $0x20] sm:$0x1] }
  0x81   : > { %v1527_v40 = vunpack.c.l.b16 %v2581_v16 }
  0x82   : > { %v1151_v22 = vshll.u32 %v3489_v34, 16  ;;  %v1344_v44 = vrot.slane %v3489_v34, 1 }
  0x84   : > { %985 = vrot.lane.b32.xlu2 %v3241_v56, %s3066_s22  ;;  %v1153_v52 = vrot.slane %v1151_v22, 1  ;;  %v1070_v22 = vsel %vm533_vm0, %v3154_v31, %v1069_v15  ;;  %v1345_v34 = vsel %vm806_vm1, %v1343_v10, %v1344_v44 }
  0x85   : > { %983 = vrot.lane.b32.xlu1 %v2501_v5, %s3066_s22 }
  0x86   : > { %v3474_v1 = vpop.permute.xlu2 %736  ;;  %981 = vrot.lane.b32.xlu0 %v3133_v14, %s3066_s22  ;;  %v1154_v59 = vsel %vm533_vm0, %v1149_v32, %v1153_v52  ;;  %v3537_v32 = vpack.c.b16 %v1535_v30, %v1535_v30  ;;  %v1197_v52 = vor.u32 %v1196_v60, %v1192_v51  ;;  %v1555_v60 = vpack.c.b16 %v1539_v37, %v1539_v37 }
  0x87   : > { %v1098_v37 = vshll.u32 %v3438_v33, 16 }
  0x88   : > { %v1663_v42 = vshll.u32 %v3537_v32, 16 }
  0x8a   : > { %v1665_v51 = vrot.slane %v1663_v42, 1 }
  0x8c   : > { %991 = vrot.lane.b32.xlu2 %v3462_v13, %s3066_s22  ;;  %v1357_v13 = vsel %vm806_vm1, %v1355_v11, %v1356_v18  ;;  %v1202_v18 = vsel %vm533_vm0, %v1197_v52, %v1201_v36  ;;  %v1666_v11 = vsel %vm533_vm0, %v3277_v43, %v1665_v51  ;;  %v1868_v52 = vrot.slane %v1555_v60, 1 }
  0x8d   : > { %989 = vrot.lane.b32.xlu1 %v3292_v7, %s3066_s22  ;;  %v1711_v36 = vshll.u32 %v1555_v60, 16  ;;  %v1856_v51 = vrot.slane %v3537_v32, 1 }
  0x8e   : > { %v3493_v14 = vpop.permute.xlu2 %748  ;;  %987 = vrot.lane.b32.xlu0 %v3468_v25, %s3066_s22 }
  0x8f   : > { %v3495_v49 = vpop.permute.xlu1 %730 }
  0x90   : > { %v3502_v20 = vpop.permute.xlu0 %726 }
  0x94   : > { %997 = vrot.lane.b32.xlu2 %v3507_v6, %s3066_s22 }
  0x95   : > { %995 = vrot.lane.b32.xlu1 %v3482_v47, %s3066_s22 }
  0x96   : > { %v3520_v5 = vpop.permute.xlu2 %754  ;;  %993 = vrot.lane.b32.xlu0 %v3264_v27, %s3066_s22 }
  0x97   : > { %v3523_v41 = vpop.permute.xlu1 %732 }
  0x98   : > { %v3528_v58 = vpop.permute.xlu0 %738 }
  0x9c   : > { %1255 = vrot.lane.b32.xlu2 %v1154_v59, %s3067_s23 }
  0x9d   : > { %1241 = vrot.lane.b32.xlu1 %v1070_v22, %s3067_s23 }
  0x9e   : > { %v858_v2 = vpop.permute.xlu2 %857  ;;  %1239 = vrot.lane.b32.xlu0 %v1058_v35, %s3067_s23  ;;  %v2897_v35 = vld [vmem:[%s3116_s19 + $0x78] sm:$0xe] }
  0x9f   : > { %v741_v31 = vpop.permute.xlu1 %740  ;;  %v2898_v10 = vor.u32 %v2897_v35, %v2896_v26  ;;  %v3590_v26 = vld [vmem:[%s3116_s19 + $0x18] sm:$0xff]  }
  0xa0   : > { %v729_v23 = vpop.permute.xlu0 %728  ;;  %v1927_v42 = vsel %vm1911_vm2, %v3188_v57, %v741_v31 }
  0xa1   : > { %v1915_v15 = vsel %vm1911_vm2, %v3202_v4, %v729_v23  ;;  %v1921_v4 = vsel %vm1911_vm2, %v3119_v0, %v3445_v46  ;;  %v2521_v0 = vld [vmem:[%s3116_s19 + $0x44] sm:$0x1]  ;;  %v2999_v46 = vld [vmem:[%s3116_s19 + $0x3c] sm:$0xe]  ;;  %v3002_v23 = vld [vmem:[%s3116_s19 + $0xc] sm:$0xe] }
  0xa2   : > { %v3549_v55 = vsel %vm1944_vm3, %v1915_v15, %v858_v2  ;;  %v1019_v44 = vunpack.c.l.b16 %v2521_v0  ;;  %v3000_v31 = vor.u32 %v2999_v46, %v3441_v53  ;;  %v1096_v53 = vshrl.u32 %v3438_v33, 16 }
  0xa4   : > { %1391 = vrot.lane.b32.xlu2 %v1357_v13, %s3068_s24  ;;  %v1867_v13 = vrot.slane %v2904_v19, 1  ;;  %v1035_v57 = vpack.c.b16 %v1019_v44, %v1019_v44  ;;  %v1331_v60 = vrot.slane %v3000_v31, 1  ;;  %v1100_v19 = vrot.slane %v1098_v37, 1 }
  0xa5   : > { %1383 = vrot.lane.b32.xlu1 %v1345_v34, %s3068_s24  ;;  %v1562_v44 = vshll.u32 %v3590_v26, 16 }
  0xa6   : > { %v864_v59 = vpop.permute.xlu2 %863  ;;  %1263 = vrot.lane.b32.xlu0 %v1202_v18, %s3067_s23  ;;  %v1855_v18 = vrot.slane %v2898_v10, 1  ;;  %v1332_v32 = vrot.slane %v1035_v57, 1  ;;  %v1103_v0 = vshll.u32 %v1035_v57, 16  ;;  %v3598_v10 = vpack.c.b16 %v1527_v40, %v1527_v40  ;;  %v2585_v57 = vld [vmem:[%s3116_s19 + $0x50] sm:$0x1] }
  0xa7   : > { %v747_v30 = vpop.permute.xlu1 %746  ;;  %v3560_v22 = vsel %vm1944_vm3, %v1921_v4, %v864_v59  ;;  %v1869_v59 = vsel %vm806_vm1, %v1867_v13, %v1868_v52  ;;  %v1320_v52 = vrot.slane %v3504_v62, 1  ;;  %v1564_v37 = vrot.slane %v1562_v44, 1 }
  0xa8   : > { %v3569_v2 = vpop.permute.xlu0 %744  ;;  %v1857_v35 = vsel %vm806_vm1, %v1855_v18, %v1856_v51  ;;  %v1933_v13 = vsel %vm1911_vm2, %v3241_v56, %v747_v30  ;;  %v1101_v30 = vor.u32 %v1100_v19, %v1096_v53  ;;  %v1105_v16 = vrot.slane %v1103_v0, 1  ;;  %v2890_v53 = vld [vmem:[%s3116_s19 + $0x48] sm:$0xf0]  ;;  %v2891_v19 = vld [vmem:[%s3116_s19 + $0x48] sm:$0xe] }
  0xa9   : > { %v1560_v51 = vshrl.u32 %v3590_v26, 16  ;;  %v1567_v62 = vshll.u32 %v3598_v10, 16  ;;  %v1919_v44 = vsel %vm1911_vm2, %v3142_v24, %v3523_v41  ;;  %v2526_v24 = vld [vmem:[%s3116_s19 + $0x80] sm:$0x1] }
  0xaa   : > { %v1106_v40 = vsel %vm533_vm0, %v1101_v30, %v1105_v16 }
  0xac   : > { %1767 = vrot.lane.b32.xlu2 %v1666_v11, %s3069_s25  ;;  %v3003_v11 = vor.u32 %v3002_v23, %v3405_v28 }
  0xad   : > { %1503 = vrot.lane.b32.xlu1 %v3264_v27, %s3070_s26  ;;  %v1713_v27 = vrot.slane %v1711_v36, 1  ;;  %v2963_v36 = vld [vmem:[%s3116_s19] sm:$0xff]  }
  0xae   : > { %v870_v15 = vpop.permute.xlu2 %869  ;;  %1495 = vrot.lane.b32.xlu0 %v3241_v56, %s3070_s26  ;;  %v1319_v33 = vrot.slane %v3003_v11, 1  ;;  %v1333_v56 = vsel %vm806_vm1, %v1331_v60, %v1332_v32  ;;  %v1569_v32 = vrot.slane %v1567_v62, 1 }
  0xaf   : > { %v3579_v34 = vsel %vm1944_vm3, %v1927_v42, %v870_v15  ;;  %v753_v4 = vpop.permute.xlu1 %752  ;;  %v1714_v46 = vsel %vm533_vm0, %v3296_v17, %v1713_v27  ;;  %v1913_v42 = vsel %vm1911_vm2, %v2963_v36, %v3502_v20  ;;  %v1531_v27 = vunpack.c.l.b16 %v2585_v57 }
  0xb0   : > { %v3587_v8 = vpop.permute.xlu0 %750  ;;  %v1321_v20 = vsel %vm806_vm1, %v1319_v33, %v1320_v52  ;;  %v1939_v11 = vsel %vm1911_vm2, %v3272_v39, %v753_v4  ;;  %v2884_v39 = vld [vmem:[%s3116_s19 + $0x18] sm:$0xf0]  ;;  %v2885_v4 = vld [vmem:[%s3116_s19 + $0x18] sm:$0xe]  ;;  %v2530_v33 = vld [vmem:[%s3116_s19 + $0xb0] sm:$0x1] }
  0xb1   : > { %v2886_v16 = vor.u32 %v2885_v4, %v2884_v39 }
  0xb4   : > { %1903 = vrot.lane.b32.xlu2 %v1869_v59, %s3071_s27  ;;  %v2830_v59 = vld [vmem:[%s3116_s19 + $0x48] sm:$0xff]  }
  0xb5   : > { %1895 = vrot.lane.b32.xlu1 %v1857_v35, %s3071_s27  ;;  %v1565_v35 = vor.u32 %v1564_v37, %v1560_v51  ;;  %v1028_v51 = vunpack.c.l.b16 %v2530_v33  ;;  %v1608_v37 = vshrl.u32 %v2830_v59, 16  ;;  %v1923_v33 = vsel %vm1911_vm2, %v3175_v50, %v3474_v1 }
  0xb6   : > { %v876_v28 = vpop.permute.xlu2 %875  ;;  %1775 = vrot.lane.b32.xlu0 %v1714_v46, %s3069_s25  ;;  %v1610_v46 = vshll.u32 %v2830_v59, 16 }
  0xb7   : > { %v3605_v23 = vsel %vm1944_vm3, %v1933_v13, %v876_v28  ;;  %v856_v15 = vpop.permute.xlu1 %855  ;;  %v1547_v28 = vpack.c.b16 %v1531_v27, %v1531_v27  ;;  %v1570_v36 = vsel %vm533_vm0, %v1565_v35, %v1569_v32  ;;  %v2872_v35 = vld [vmem:[%s3116_s19 + $0x78] sm:$0xf0]  ;;  %v2873_v32 = vld [vmem:[%s3116_s19 + $0x78] sm:$0xe] }
  0xb8   : > { %v1946_v18 = vsel %vm1944_vm3, %v1913_v42, %v856_v15  ;;  %v3617_v31 = vpop.permute.xlu0 %756  ;;  %v2892_v42 = vor.u32 %v2891_v19, %v2890_v53  ;;  %v2964_v15 = vld [vmem:[%s3116_s19 + $0x18] sm:$0xff]   ;;  %v1612_v62 = vrot.slane %v1610_v46, 1  ;;  %v1832_v53 = vrot.slane %v3598_v10, 1 }
  0xb9   : > { %v1615_v57 = vshll.u32 %v1547_v28, 16  ;;  %v1844_v27 = vrot.slane %v1547_v28, 1  ;;  %v3655_v19 = vpack.c.b16 %v1028_v51, %v1028_v51  ;;  %v2874_v4 = vor.u32 %v2873_v32, %v2872_v35  ;;  %v3004_v51 = vld [vmem:[%s3116_s19 + $0x84] sm:$0xf0] }
  0xbb   : > { %v1617_v28 = vrot.slane %v1615_v57, 1 }
  0xbc   : > { %1375 = vrot.lane.b32.xlu2 %v1333_v56, %s3068_s24  ;;  %v1917_v56 = vsel %vm1911_vm2, %v2964_v15, %v3495_v49  ;;  %v3674_v15 = vld [vmem:[%s3116_s19 + $0xb4] sm:$0xff]  }
  0xbd   : > { %1367 = vrot.lane.b32.xlu1 %v1321_v20, %s3068_s24  ;;  %v1843_v20 = vrot.slane %v2892_v42, 1  ;;  %v1211_v42 = vshll.u32 %v3655_v19, 16 }
  0xbe   : > { %v882_v60 = vpop.permute.xlu2 %881  ;;  %1247 = vrot.lane.b32.xlu0 %v1106_v40, %s3067_s23  ;;  %v1024_v40 = vunpack.c.l.b16 %v2526_v24  ;;  %v1346_v24 = vrot.slane %v2874_v4, 1 }
  0xbf   : > { %v3629_v0 = vsel %vm1944_vm3, %v1939_v11, %v882_v60  ;;  %v862_v13 = vpop.permute.xlu1 %861  ;;  %v1831_v60 = vrot.slane %v2886_v16, 1  ;;  %v1845_v39 = vsel %vm806_vm1, %v1843_v20, %v1844_v27  ;;  %v3681_v16 = vld [vmem:[%s3116_s19 + $0x84] sm:$0xff]   ;;  %v1213_v57 = vrot.slane %v1211_v42, 1 }
  0xc0   : > { %v1952_v52 = vsel %vm1944_vm3, %v1919_v44, %v862_v13  ;;  %v860_v30 = vpop.permute.xlu0 %859  ;;  %v2965_v44 = vld [vmem:[%s3116_s19 + $0x48] sm:$0xff]   ;;  %v1613_v13 = vor.u32 %v1612_v62, %v1608_v37  ;;  %v1040_v10 = vpack.c.b16 %v1024_v40, %v1024_v40  ;;  %v1931_v20 = vsel %vm1911_vm2, %v3247_v63, %v3569_v2  ;;  %v2594_v40 = vld [vmem:[%s3116_s19 + $0xbc] sm:$0x1] }
  0xc1   : > { %v3645_v41 = vsel %vm1944_vm3, %v1917_v56, %v860_v30  ;;  %v1925_v46 = vsel %vm1911_vm2, %v2965_v44, %v3528_v58  ;;  %v3677_v56 = vld [vmem:[%s3116_s19 + $0xb4] sm:$0xf0]  ;;  %v1214_v2 = vsel %vm533_vm0, %v3296_v17, %v1213_v57  ;;  %v1937_v17 = vsel %vm1911_vm2, %v3292_v7, %v3587_v8 }
  0xc2   : > { %v1618_v30 = vsel %vm533_vm0, %v1613_v13, %v1617_v28  ;;  %v1347_v50 = vrot.slane %v1040_v10, 1  ;;  %v1163_v1 = vshll.u32 %v1040_v10, 16  ;;  %v2879_v13 = vld [vmem:[%s3116_s19 + $0xa8] sm:$0xe]  ;;  %v1540_v28 = vunpack.c.l.b16 %v2594_v40 }
  0xc3   : > { %v1935_v57 = vsel %vm1911_vm2, %v3217_v21, %v3493_v14  ;;  %v1716_v8 = vshrl.u32 %v3674_v15, 16  ;;  %v1668_v21 = vshrl.u32 %v3681_v16, 16 }
  0xc4   : > { %1751 = vrot.lane.b32.xlu2 %v1570_v36, %s3069_s25  ;;  %v1348_v35 = vsel %vm806_vm1, %v1346_v24, %v1347_v50  ;;  %v1165_v32 = vrot.slane %v1163_v1, 1  ;;  %v2522_v24 = vld [vmem:[%s3116_s19 + $0x50] sm:$0x1]  ;;  %v1359_v1 = vrot.slane %v3655_v19, 1 }
  0xc5   : > { %1487 = vrot.lane.b32.xlu1 %v2830_v59, %s3070_s26  ;;  %v1020_v40 = vunpack.c.l.b16 %v2522_v24  ;;  %v3768_v24 = vld [vmem:[%s3116_s19 + $0x54] sm:$0xf0] }
  0xc6   : > { %v968_v49 = vpop.permute.xlu2 %967  ;;  %1479 = vrot.lane.b32.xlu0 %v3590_v26, %s3070_s26  ;;  %v1833_v26 = vsel %vm806_vm1, %v1831_v60, %v1832_v53  ;;  %v3005_v60 = vld [vmem:[%s3116_s19 + $0x84] sm:$0xe] }
  0xc7   : > { %v3652_v11 = vsel %vm1977_vm4, %v1946_v18, %v968_v49  ;;  %v868_v59 = vpop.permute.xlu1 %867  ;;  %v2966_v53 = vld [vmem:[%s3116_s19 + $0x60] sm:$0xff]  }
  0xc8   : > { %v1958_v18 = vsel %vm1944_vm3, %v1925_v46, %v868_v59  ;;  %v866_v58 = vpop.permute.xlu0 %865  ;;  %v2878_v46 = vld [vmem:[%s3116_s19 + $0xa8] sm:$0xf0] }
  0xc9   : > { %v3668_v36 = vsel %vm1944_vm3, %v1923_v33, %v866_v58  ;;  %v2590_v59 = vld [vmem:[%s3116_s19 + $0x8c] sm:$0x1]  ;;  %v2880_v10 = vor.u32 %v2879_v13, %v2878_v46  ;;  %v1718_v58 = vshll.u32 %v3674_v15, 16  ;;  %v3008_v46 = vld [vmem:[%s3116_s19 + $0xb4] sm:$0xe] }
  0xca   : > { %v1536_v4 = vunpack.c.l.b16 %v2590_v59 }
  0xcc   : > { %1887 = vrot.lane.b32.xlu2 %v1845_v39, %s3071_s27  ;;  %v1166_v39 = vsel %vm533_vm0, %v3277_v43, %v1165_v32  ;;  %v1670_v43 = vshll.u32 %v3681_v16, 16 }
  0xcd   : > { %1879 = vrot.lane.b32.xlu1 %v1833_v26, %s3071_s27  ;;  %v3715_v26 = vpack.c.b16 %v1540_v28, %v1540_v28  ;;  %v1943_v28 = vsel %vm1911_vm2, %v3311_v48, %v3617_v31 }
  0xce   : > { %v974_v37 = vpop.permute.xlu2 %973  ;;  %1759 = vrot.lane.b32.xlu0 %v1618_v30, %s3069_s25  ;;  %v3006_v30 = vor.u32 %v3005_v60, %v3004_v51  ;;  %v1672_v14 = vrot.slane %v1670_v43, 1 }
  0xcf   : > { %v3686_v62 = vsel %vm1977_vm4, %v1952_v52, %v974_v37  ;;  %v874_v27 = vpop.permute.xlu1 %873  ;;  %v1929_v52 = vsel %vm1911_vm2, %v2966_v53, %v3457_v12  ;;  %v1552_v37 = vpack.c.b16 %v1536_v4, %v1536_v4 }
  0xd0   : > { %v1964_v49 = vsel %vm1944_vm3, %v1931_v20, %v874_v27  ;;  %v872_v44 = vpop.permute.xlu0 %871  ;;  %v1720_v20 = vrot.slane %v1718_v58, 1  ;;  %v1723_v27 = vshll.u32 %v3715_v26, 16  ;;  %v1858_v19 = vrot.slane %v3006_v30, 1  ;;  %v2967_v58 = vld [vmem:[%s3116_s19 + $0xa8] sm:$0xff]   ;;  %v3765_v30 = vld [vmem:[%s3116_s19 + $0x54] sm:$0xff]  }
  0xd1   : > { %v3703_v63 = vsel %vm1944_vm3, %v1929_v52, %v872_v44  ;;  %v1675_v60 = vshll.u32 %v1552_v37, 16  ;;  %v2860_v52 = vld [vmem:[%s3116_s19 + $0x18] sm:$0xf0]  ;;  %v2861_v44 = vld [vmem:[%s3116_s19 + $0x18] sm:$0xe] }
  0xd2   : > { %v1725_v59 = vrot.slane %v1723_v27, 1 }
  0xd4   : > { %1385 = vrot.lane.b32.xlu2 %v1348_v35, %s3068_s24  ;;  %v1859_v35 = vrot.slane %v1552_v37, 1  ;;  %v3009_v37 = vor.u32 %v3008_v46, %v3677_v56 }
  0xd5   : > { %1265 = vrot.lane.b32.xlu1 %v1214_v2, %s3067_s23  ;;  %v3747_v2 = vpack.c.b16 %v1020_v40, %v1020_v40  ;;  %v2586_v40 = vld [vmem:[%s3116_s19 + $0x5c] sm:$0x1] }
  0xd6   : > { %v980_v12 = vpop.permute.xlu2 %979  ;;  %1257 = vrot.lane.b32.xlu0 %v1166_v39, %s3067_s23  ;;  %v1860_v39 = vsel %vm806_vm1, %v1858_v19, %v1859_v35  ;;  %v1870_v56 = vrot.slane %v3009_v37, 1  ;;  %v1871_v35 = vrot.slane %v3715_v26, 1  ;;  %v1620_v37 = vshrl.u32 %v3765_v30, 16 }
  0xd7   : > { %v3712_v33 = vsel %vm1977_vm4, %v1958_v18, %v980_v12  ;;  %v880_v42 = vpop.permute.xlu1 %879  ;;  %v1358_v18 = vrot.slane %v2880_v10, 1  ;;  %v1673_v10 = vor.u32 %v1672_v14, %v1668_v21  ;;  %v2862_v12 = vor.u32 %v2861_v44, %v2860_v52  ;;  %v2582_v21 = vld [vmem:[%s3116_s19 + $0x2c] sm:$0x1]  ;;  %v3011_v14 = vld [vmem:[%s3116_s19 + $0x24] sm:$0xe] }
  0xd8   : > { %v3724_v50 = vsel %vm1944_vm3, %v1937_v17, %v880_v42  ;;  %v878_v7 = vpop.permute.xlu0 %877  ;;  %v1941_v17 = vsel %vm1911_vm2, %v2967_v58, %v3520_v5  ;;  %v1115_v43 = vshll.u32 %v3747_v2, 16  ;;  %v1323_v5 = vrot.slane %v3497_v61, 1 }
  0xd9   : > { %v3732_v51 = vsel %vm1944_vm3, %v1935_v57, %v878_v7  ;;  %v1360_v32 = vsel %vm806_vm1, %v1358_v18, %v1359_v1  ;;  %v1322_v1 = vrot.slane %v2862_v12, 1  ;;  %v3774_v57 = vld [vmem:[%s3116_s19 + $0x24] sm:$0xff]   ;;  %v1532_v44 = vunpack.c.l.b16 %v2586_v40 }
  0xda   : > { %v3010_v7 = vld [vmem:[%s3116_s19 + $0x24] sm:$0xf0]  ;;  %v1528_v46 = vunpack.c.l.b16 %v2582_v21 }
  0xdb   : > { %v1324_v61 = vsel %vm806_vm1, %v1322_v1, %v1323_v5  ;;  %v3012_v58 = vor.u32 %v3011_v14, %v3010_v7 }
  0xdc   : > { %1505 = vrot.lane.b32.xlu2 %v3674_v15, %s3070_s26  ;;  %v1721_v15 = vor.u32 %v1720_v20, %v1716_v8  ;;  %v1117_v20 = vrot.slane %v1115_v43, 1  ;;  %v1544_v12 = vpack.c.b16 %v1528_v46, %v1528_v46 }
  0xdd   : > { %1497 = vrot.lane.b32.xlu1 %v3681_v16, %s3070_s26 }
  0xde   : > { %v986_v53 = vpop.permute.xlu2 %985  ;;  %1393 = vrot.lane.b32.xlu0 %v1360_v32, %s3068_s24  ;;  %v1726_v31 = vsel %vm533_vm0, %v1721_v15, %v1725_v59  ;;  %v1872_v15 = vsel %vm806_vm1, %v1870_v56, %v1871_v35  ;;  %v1579_v40 = vshll.u32 %v1544_v12, 16  ;;  %v1170_v35 = vshll.u32 %v3468_v25, 16 }
  0xdf   : > { %v3745_v13 = vsel %vm1977_vm4, %v1964_v49, %v986_v53  ;;  %v886_v16 = vpop.permute.xlu1 %885  ;;  %v1677_v49 = vrot.slane %v1675_v60, 1  ;;  %v2866_v60 = vld [vmem:[%s3116_s19 + $0x48] sm:$0xf0]  ;;  %v2867_v53 = vld [vmem:[%s3116_s19 + $0x48] sm:$0xe] }
  0xe0   : > { %v1976_v4 = vsel %vm1944_vm3, %v1943_v28, %v886_v16  ;;  %v884_v42 = vpop.permute.xlu0 %883  ;;  %v2868_v26 = vor.u32 %v2867_v53, %v2866_v60  ;;  %v2531_v28 = vld [vmem:[%s3116_s19 + $0xbc] sm:$0x1]  ;;  %v1581_v46 = vrot.slane %v1579_v40, 1 }
  0xe1   : > { %v3759_v48 = vsel %vm1944_vm3, %v1941_v17, %v884_v42  ;;  %v1678_v18 = vsel %vm533_vm0, %v1673_v10, %v1677_v49  ;;  %v2527_v10 = vld [vmem:[%s3116_s19 + $0x8c] sm:$0x1]  ;;  %v1574_v49 = vshll.u32 %v3774_v57, 16 }
  0xe2   : > { %v1334_v42 = vrot.slane %v2868_v26, 1  ;;  %v1025_v1 = vunpack.c.l.b16 %v2527_v10 }
  0xe4   : > { %1897 = vrot.lane.b32.xlu2 %v1860_v39, %s3071_s27  ;;  %v3806_v39 = vpack.c.b16 %v1532_v44, %v1532_v44  ;;  %v3834_v14 = vpack.c.b16 %v1025_v1, %v1025_v1  ;;  %v2177_v1 = vld [vmem:[%s4311_s1 + $0x8] sm:$0x1] }
  0xe5   : > { %1777 = vrot.lane.b32.xlu1 %v1726_v31, %s3069_s25  ;;  %v1029_v31 = vunpack.c.l.b16 %v2531_v28  ;;  %v1168_v28 = vshrl.u32 %v3468_v25, 16 }
  0xe6   : > { %v3778_v8 = vpop.permute.xlu2 %991  ;;  %1769 = vrot.lane.b32.xlu0 %v1678_v18, %s3069_s25  ;;  %v1835_v18 = vrot.slane %v1544_v12, 1  ;;  %v1627_v7 = vshll.u32 %v3806_v39, 16  ;;  %v1175_v10 = vshll.u32 %v3834_v14, 16  ;;  %v3017_v12 = vld [vmem:[%s3116_s19 + $0xb4] sm:$0xe] }
  0xe7   : > { %v972_v27 = vpop.permute.xlu1 %971 }
  0xe8   : > { %v3784_v19 = vsel %vm1977_vm4, %v3645_v41, %v972_v27  ;;  %v970_v32 = vpop.permute.xlu0 %969  ;;  %v1118_v41 = vsel %vm533_vm0, %v3207_v9, %v1117_v20  ;;  %v1576_v27 = vrot.slane %v1574_v49, 1  ;;  %v1629_v60 = vrot.slane %v1627_v7, 1 }
  0xe9   : > { %v3794_v52 = vsel %vm1977_vm4, %v3549_v55, %v970_v32  ;;  %v1622_v55 = vshll.u32 %v3765_v30, 16 }
  0xeb   : > { %v1624_v20 = vrot.slane %v1622_v55, 1  ;;  %v1172_v55 = vrot.slane %v1170_v35, 1 }
  0xec   : > { %1369 = vrot.lane.b32.xlu2 %v1324_v61, %s3068_s24  ;;  %v1218_v61 = vshll.u32 %v3482_v47, 16 }
  0xed   : > { %1249 = vrot.lane.b32.xlu1 %v1118_v41, %s3067_s23  ;;  %v1625_v32 = vor.u32 %v1624_v20, %v1620_v37  ;;  %v1847_v20 = vrot.slane %v3806_v39, 1  ;;  %v3018_v39 = vor.u32 %v3017_v12, %v3485_v54  ;;  %v2519_v54 = vld [vmem:[%s3116_s19 + $0x2c] sm:$0x1] }
  0xee   : > { %v998_v59 = vpop.permute.xlu2 %997  ;;  %1905 = vrot.lane.b32.xlu0 %v1872_v15, %s3071_s27  ;;  %v1216_v15 = vshrl.u32 %v3482_v47, 16 }
  0xef   : > { %v3803_v16 = vsel %vm1977_vm4, %v1976_v4, %v998_v59  ;;  %v978_v9 = vpop.permute.xlu1 %977  ;;  %v1335_v4 = vrot.slane %v3747_v2, 1  ;;  %v1572_v2 = vshrl.u32 %v3774_v57, 16  ;;  %v1630_v49 = vsel %vm533_vm0, %v1625_v32, %v1629_v60 }
  0xf0   : > { %v3813_v17 = vsel %vm1977_vm4, %v3668_v36, %v978_v9  ;;  %v976_v43 = vpop.permute.xlu0 %975  ;;  %v1834_v36 = vrot.slane %v3012_v58, 1  ;;  %v1230_v60 = vshll.u32 %v3507_v6, 16 }
  0xf1   : > { %v3818_v5 = vsel %vm1977_vm4, %v3560_v22, %v976_v43  ;;  %v1336_v56 = vsel %vm806_vm1, %v1334_v42, %v1335_v4  ;;  %v3827_v22 = vpack.c.b16 %v1029_v31, %v1029_v31  ;;  %v1577_v44 = vor.u32 %v1576_v27, %v1572_v2  ;;  %v2595_v4 = vld [vmem:[%s3116_s19 + $0xc8] sm:$0x1] }
  0xf2   : > { %v1836_v41 = vsel %vm806_vm1, %v1834_v36, %v1835_v18  ;;  %v1173_v43 = vor.u32 %v1172_v55, %v1168_v28  ;;  %v3020_v18 = vld [vmem:[%s3116_s19 + $0x84] sm:$0xe]  ;;  %v1541_v7 = vunpack.c.l.b16 %v2595_v4  ;;  %v2187_v36 = vunpack.c.l.b16 %v2177_v1 }
  0xf3   : > { %v1223_v26 = vshll.u32 %v3827_v22, 16  ;;  %v1582_v47 = vsel %vm533_vm0, %v1577_v44, %v1581_v46  ;;  %v2636_v55 = vld [vmem:[%s4311_s1] sm:$0xff] }
  0xf4   : > { %1489 = vrot.lane.b32.xlu2 %v3765_v30, %s3070_s26  ;;  %v3014_v30 = vld [vmem:[%s3116_s19 + $0x54] sm:$0xe]  ;;  %v2189_v35 = vpack.c.b16 %v2187_v36, %v2187_v36 }
  0xf5   : > { %1481 = vrot.lane.b32.xlu1 %v3774_v57, %s3070_s26  ;;  %v1220_v57 = vrot.slane %v1218_v61, 1  ;;  %v1225_v42 = vrot.slane %v1223_v26, 1  ;;  %v3015_v25 = vor.u32 %v3014_v30, %v3768_v24  ;;  %v2591_v24 = vld [vmem:[%s3116_s19 + $0x98] sm:$0x1]  ;;  %v1361_v26 = vrot.slane %v3018_v39, 1 }
  0xf6   : > { %v3832_v21 = vpop.permute.xlu2 %1255  ;;  %1377 = vrot.lane.b32.xlu0 %v1336_v56, %s3068_s24  ;;  %v1537_v32 = vunpack.c.l.b16 %v2591_v24  ;;  %v2226_v44 = vsel %vm2224_vm5, %v2189_v35, 0  ;;  %v2899_v35 = vld [vmem:[%s3116_s19 + $0x90] sm:$0xf0] }
  0xf7   : > { %v3838_v53 = vpop.permute.xlu1 %983  ;;  %v1221_v58 = vor.u32 %v1220_v57, %v1216_v15  ;;  %v1846_v40 = vrot.slane %v3015_v25, 1  ;;  %v3021_v15 = vor.u32 %v3020_v18, %v3471_v45  ;;  %2924 = vmatpush.bf16.msra.mxu2 %v2226_v44  ;;  %2925 = vmatpush.bf16.msra.mxu3 %v2226_v44  ;;  %v1228_v45 = vshrl.u32 %v3507_v6, 16 }
  0xf8   : > { %v982_v59 = vpop.permute.xlu0 %981  ;;  %2234 = vmatpush.bf16.msra.mxu0 %v2226_v44  ;;  %v3888_v28 = vpack.c.b16 %v1537_v32, %v1537_v32  ;;  %2923 = vmatpush.bf16.msra.mxu1 %v2226_v44  ;;  %v1072_v32 = vshrl.u32 %v3419_v29, 16  ;;  %v2900_v44 = vld [vmem:[%s3116_s19 + $0x90] sm:$0xe] }
  0xf9   : > { %v3847_v9 = vsel %vm1977_vm4, %v3579_v34, %v982_v59  ;;  %v1177_v34 = vrot.slane %v1175_v10, 1  ;;  %v1226_v27 = vsel %vm533_vm0, %v1221_v58, %v1225_v42  ;;  %v1848_v46 = vsel %vm806_vm1, %v1846_v40, %v1847_v20 }
  0xfa   : > { %v1362_v59 = vrot.slane %v3827_v22, 1  ;;  %v1232_v10 = vrot.slane %v1230_v60, 1  ;;  %v1349_v22 = vrot.slane %v3021_v15, 1  ;;  %v1350_v58 = vrot.slane %v3834_v14, 1  ;;  %v2523_v15 = vld [vmem:[%s3116_s19 + $0x5c] sm:$0x1] }
  0xfb   : > { %v1178_v56 = vsel %vm533_vm0, %v1173_v43, %v1177_v34  ;;  %v1017_v42 = vunpack.c.l.b16 %v2519_v54  ;;  %2927 = vmatpush.bf16.msra.mxu2 %v2636_v55  ;;  %2928 = vmatpush.bf16.msra.mxu3 %v2636_v55  ;;  %v1687_v1 = vshll.u32 %v3888_v28, 16  ;;  %v3023_v54 = vld [vmem:[%s3116_s19 + $0x54] sm:$0xe] }
  0xfc   : > { %1881 = vrot.lane.b32.xlu2 %v1836_v41, %s3071_s27  ;;  %v3879_v41 = vpack.c.b16 %v1541_v7, %v1541_v7  ;;  %2235 = vmatpush.bf16.msra.mxu0 %v2636_v55  ;;  %v1363_v18 = vsel %vm806_vm1, %v1361_v26, %v1362_v59  ;;  %v1351_v20 = vsel %vm806_vm1, %v1349_v22, %v1350_v58 }
  0xfd   : > { %1761 = vrot.lane.b32.xlu1 %v1630_v49, %s3069_s25  ;;  %2926 = vmatpush.bf16.msra.mxu1 %v2636_v55  ;;  %v1689_v36 = vrot.slane %v1687_v1, 1  ;;  %v2901_v59 = vor.u32 %v2900_v44, %v2899_v35  ;;  %v3026_v55 = vld [vmem:[%s3116_s19 + $0x24] sm:$0xe]  ;;  %v1995_v44 = vsel %vm1977_vm4, %v3703_v63, %v3838_v53 }
  0xfe   : > { %v3856_v31 = vpop.permute.xlu2 %1391  ;;  %1753 = vrot.lane.b32.xlu0 %v1582_v47, %s3069_s25  ;;  %v1735_v12 = vshll.u32 %v3879_v41, 16  ;;  %v1874_v22 = vrot.slane %v3879_v41, 1  ;;  %v2028_v63 = vsel %vm2010_vm6, %v1995_v44, %v3832_v21 }
  0xff   : > { %v990_v37 = vpop.permute.xlu1 %989 }
 0x100   : > { %v3867_v2 = vsel %vm1977_vm4, %v3732_v51, %v990_v37  ;;  %v988_v61 = vpop.permute.xlu0 %987  ;;  %v2833_v51 = vld [vmem:[%s3116_s19 + $0x90] sm:$0xff]   ;;  %v1737_v14 = vrot.slane %v1735_v12, 1  ;;  %v1074_v37 = vshll.u32 %v3419_v29, 16  ;;  %v2583_v29 = vld [vmem:[%s3116_s19 + $0x38] sm:$0x1] }
 0x101   : > { %v3873_v30 = vsel %vm1977_vm4, %v3605_v23, %v988_v61  ;;  %v1682_v57 = vshll.u32 %v2833_v51, 16  ;;  %v1680_v4 = vshrl.u32 %v2833_v51, 16  ;;  %v2905_v61 = vld [vmem:[%s3116_s19 + $0xc0] sm:$0xf0] }
 0x102   : > { %v1076_v60 = vrot.slane %v1074_v37, 1  ;;  %v3949_v37 = vld [vmem:[%s3116_s19 + $0x30] sm:$0xff]  }
 0x103   : > { %v1684_v34 = vrot.slane %v1682_v57, 1 }
 0x104   : > { %1267 = vrot.lane.b32.xlu2 %v1226_v27, %s3067_s23 }
 0x105   : > { %1259 = vrot.lane.b32.xlu1 %v1178_v56, %s3067_s23  ;;  %v1685_v24 = vor.u32 %v1684_v34, %v1680_v4  ;;  %v2906_v56 = vld [vmem:[%s3116_s19 + $0xc0] sm:$0xe]  ;;  %v1529_v4 = vunpack.c.l.b16 %v2583_v29  ;;  %v1122_v34 = vshll.u32 %v3430_v3, 16 }
 0x106   : > { %v3884_v23 = vpop.permute.xlu2 %1767  ;;  %1889 = vrot.lane.b32.xlu0 %v1848_v46, %s3071_s27  ;;  %v2907_v26 = vor.u32 %v2906_v56, %v2905_v61  ;;  %v1120_v56 = vshrl.u32 %v3430_v3, 16 }
 0x107   : > { %v996_v49 = vpop.permute.xlu1 %995  ;;  %v1690_v57 = vsel %vm533_vm0, %v1685_v24, %v1689_v36  ;;  %v4321_v24 = vld [vmem:[#allocation5_spill] sm:$0xff] }
 0x108   : > { %v3898_v47 = vsel %vm1977_vm4, %v3759_v48, %v996_v49  ;;  %v994_v25 = vpop.permute.xlu0 %993  ;;  %v3907_v48 = vor.u32 %v1232_v10, %v1228_v45  ;;  %v1021_v10 = vunpack.c.l.b16 %v2523_v15  ;;  %v1873_v12 = vrot.slane %v2907_v26, 1 }
 0x109   : > { %v3903_v43 = vsel %vm1977_vm4, %v3629_v0, %v994_v25  ;;  %v3912_v0 = vpack.c.b16 %v1017_v42, %v1017_v42  ;;  %v1861_v42 = vrot.slane %v2901_v59, 1  ;;  %v1862_v25 = vrot.slane %v3888_v28, 1 }
 0x10a   : > { %v1738_v40 = vsel %vm533_vm0, %v3907_v48, %v1737_v14  ;;  %v1037_v1 = vpack.c.b16 %v1021_v10, %v1021_v10  ;;  %v3024_v14 = vor.u32 %v3023_v54, %v3433_v38  ;;  %v1875_v41 = vsel %vm806_vm1, %v1873_v12, %v1874_v22  ;;  %v2831_v22 = vld [vmem:[%s3116_s19 + $0x60] sm:$0xff]  }
 0x10b   : > { %v3027_v36 = vor.u32 %v3026_v55, %v4321_v24  ;;  %v1124_v38 = vrot.slane %v1122_v34, 1  ;;  %v1584_v54 = vshrl.u32 %v3949_v37, 16  ;;  %v1634_v34 = vshll.u32 %v2831_v22, 16  ;;  %v2532_v24 = vld [vmem:[%s3116_s19 + $0xc8] sm:$0x1] }
 0x10c   : > { %1499 = vrot.lane.b32.xlu2 %v2833_v51, %s3070_s26  ;;  %v1079_v51 = vshll.u32 %v3912_v0, 16  ;;  %v1338_v28 = vrot.slane %v1037_v1, 1  ;;  %v1337_v61 = vrot.slane %v3024_v14, 1  ;;  %v1127_v35 = vshll.u32 %v1037_v1, 16 }
 0x10d   : > { %1395 = vrot.lane.b32.xlu1 %v1363_v18, %s3068_s24  ;;  %v1125_v59 = vor.u32 %v1124_v38, %v1120_v56  ;;  %v2528_v38 = vld [vmem:[%s3116_s19 + $0x98] sm:$0x1]  ;;  %v1636_v44 = vrot.slane %v1634_v34, 1  ;;  %v4028_v34 = vld [vmem:[%s3116_s19 + $0x9c] sm:$0xff]  }
 0x10e   : > { %v3915_v7 = vpop.permute.xlu2 %1903  ;;  %1387 = vrot.lane.b32.xlu0 %v1351_v20, %s3068_s24  ;;  %v1081_v45 = vrot.slane %v1079_v51, 1  ;;  %v1326_v51 = vrot.slane %v3912_v0, 1  ;;  %v1339_v26 = vsel %vm806_vm1, %v1337_v61, %v1338_v28  ;;  %v1129_v55 = vrot.slane %v1127_v35, 1 }
 0x10f   : > { %v1242_v27 = vpop.permute.xlu1 %1241 }
 0x110   : > { %v3925_v39 = vsel %vm2010_vm6, %v3794_v52, %v1242_v27  ;;  %v3930_v46 = vpop.permute.xlu0 %1239  ;;  %v1077_v52 = vor.u32 %v1076_v60, %v1072_v32  ;;  %v3955_v27 = vpack.c.b16 %v1529_v4, %v1529_v4  ;;  %v1325_v60 = vrot.slane %v3027_v36, 1 }
 0x111   : > { %v1130_v21 = vsel %vm533_vm0, %v1125_v59, %v1129_v55  ;;  %v2875_v59 = vld [vmem:[%s3116_s19 + $0x90] sm:$0xf0]  ;;  %v2876_v55 = vld [vmem:[%s3116_s19 + $0x90] sm:$0xe] }
 0x112   : > { %v1082_v18 = vsel %vm533_vm0, %v1077_v52, %v1081_v45  ;;  %v2587_v52 = vld [vmem:[%s3116_s19 + $0x68] sm:$0x1]  ;;  %v1327_v53 = vsel %vm806_vm1, %v1325_v60, %v1326_v51  ;;  %v2003_v45 = vsel %vm1977_vm4, %v3724_v50, %v3778_v8  ;;  %v2893_v8 = vld [vmem:[%s3116_s19 + $0x60] sm:$0xf0]  ;;  %v1030_v60 = vunpack.c.l.b16 %v2532_v24  ;;  %v2882_v24 = vld [vmem:[%s3116_s19 + $0xc0] sm:$0xe] }
 0x114   : > { %1779 = vrot.lane.b32.xlu2 %v1738_v40, %s3069_s25  ;;  %v1586_v40 = vshll.u32 %v3949_v37, 16 }
 0x115   : > { %1771 = vrot.lane.b32.xlu1 %v1690_v57, %s3069_s25  ;;  %v1591_v57 = vshll.u32 %v3955_v27, 16 }
 0x116   : > { %v3939_v49 = vpop.permute.xlu2 %1375  ;;  %1507 = vrot.lane.b32.xlu0 %v3507_v6, %s3070_s26  ;;  %v1863_v6 = vsel %vm806_vm1, %v1861_v42, %v1862_v25  ;;  %v1588_v3 = vrot.slane %v1586_v40, 1  ;;  %v1533_v25 = vunpack.c.l.b16 %v2587_v52  ;;  %v4012_v52 = vpack.c.b16 %v1030_v60, %v1030_v60 }
 0x117   : > { %v1384_v58 = vpop.permute.xlu1 %1383  ;;  %v1593_v12 = vrot.slane %v1591_v57, 1  ;;  %v1026_v57 = vunpack.c.l.b16 %v2528_v38  ;;  %v2592_v38 = vld [vmem:[%s3116_s19 + $0xa4] sm:$0x1] }
 0x118   : > { %v1264_v20 = vpop.permute.xlu0 %1263  ;;  %v2061_v10 = vsel %vm2043_vm7, %v2028_v63, %v1384_v58  ;;  %v1589_v29 = vor.u32 %v1588_v3, %v1584_v54  ;;  %v2894_v58 = vld [vmem:[%s3116_s19 + $0x60] sm:$0xe]  ;;  %v1549_v28 = vpack.c.b16 %v1533_v25, %v1533_v25 }
 0x119   : > { %v2036_v4 = vsel %vm2010_vm6, %v2003_v45, %v1264_v20  ;;  %v2888_v20 = vld [vmem:[%s3116_s19 + $0x30] sm:$0xe]  ;;  %v2895_v40 = vor.u32 %v2894_v58, %v2893_v8 }
 0x11a   : > { %v1594_v14 = vsel %vm533_vm0, %v1589_v29, %v1593_v12  ;;  %v2069_v36 = vsel %vm2043_vm7, %v2036_v4, %v3856_v31  ;;  %v1632_v31 = vshrl.u32 %v2831_v22, 16  ;;  %v1850_v54 = vrot.slane %v1549_v28, 1 }
 0x11b   : > { %v1639_v3 = vshll.u32 %v1549_v28, 16  ;;  %v1042_v29 = vpack.c.b16 %v1026_v57, %v1026_v57  ;;  %v2877_v12 = vor.u32 %v2876_v55, %v2875_v59 }
 0x11c   : > { %1243 = vrot.lane.b32.xlu2 %v1082_v18, %s3067_s23  ;;  %v1637_v63 = vor.u32 %v1636_v44, %v1632_v31  ;;  %v4322_v44 = vld [vmem:[#allocation4_spill] sm:$0xff] }
 0x11d   : > { %1907 = vrot.lane.b32.xlu1 %v1875_v41, %s3071_s27  ;;  %v2887_v41 = vld [vmem:[%s3116_s19 + $0x30] sm:$0xf0]  ;;  %v1352_v4 = vrot.slane %v2877_v12, 1  ;;  %v1353_v8 = vrot.slane %v1042_v29, 1  ;;  %v1187_v58 = vshll.u32 %v1042_v29, 16 }
 0x11e   : > { %v3960_v32 = vpop.permute.xlu2 %1751  ;;  %1899 = vrot.lane.b32.xlu0 %v1863_v6, %s3071_s27  ;;  %v2889_v35 = vor.u32 %v2888_v20, %v2887_v41  ;;  %v2881_v20 = vld [vmem:[%s3116_s19 + $0xc0] sm:$0xf0] }
 0x11f   : > { %v1504_v15 = vpop.permute.xlu1 %1503  ;;  %v1189_v28 = vrot.slane %v1187_v58, 1 }
 0x120   : > { %v1496_v0 = vpop.permute.xlu0 %1495  ;;  %v2102_v61 = vsel %vm2076_vm8, %v2069_v36, %v1504_v15  ;;  %v1849_v15 = vrot.slane %v2895_v40, 1  ;;  %v2596_v36 = vld [vmem:[%s3116_s19 + $0xd4] sm:$0x1]  ;;  %v3029_v40 = vld [vmem:[%s3116_s19 + $0x9c] sm:$0xe] }
 0x121   : > { %v2094_v42 = vsel %vm2076_vm8, %v2061_v10, %v1496_v0  ;;  %v1837_v0 = vrot.slane %v2889_v35, 1  ;;  %v1641_v10 = vrot.slane %v1639_v3, 1  ;;  %v2883_v35 = vor.u32 %v2882_v24, %v2881_v20 }
 0x122   : > { %v2127_v1 = vsel %vm2109_vm9, %v2094_v42, %v3884_v23  ;;  %v1851_v45 = vsel %vm806_vm1, %v1849_v15, %v1850_v54  ;;  %v1542_v60 = vunpack.c.l.b16 %v2596_v36  ;;  %v1190_v15 = vsel %vm533_vm0, %v4322_v44, %v1189_v28  ;;  %v3032_v36 = vld [vmem:[%s3116_s19 + $0xcc] sm:$0xe] }
 0x123   : > { %v1642_v25 = vsel %vm533_vm0, %v1637_v63, %v1641_v10  ;;  %v1538_v54 = vunpack.c.l.b16 %v2592_v38  ;;  %v1364_v57 = vrot.slane %v2883_v35, 1 }
 0x124   : > { %1379 = vrot.lane.b32.xlu2 %v1339_v26, %s3068_s24  ;;  %v4058_v59 = vpack.c.b16 %v1542_v60, %v1542_v60 }
 0x125   : > { %1371 = vrot.lane.b32.xlu1 %v1327_v53, %s3068_s24  ;;  %v1554_v29 = vpack.c.b16 %v1538_v54, %v1538_v54 }
 0x126   : > { %v3984_v50 = vpop.permute.xlu2 %1887  ;;  %1251 = vrot.lane.b32.xlu0 %v1130_v21, %s3067_s23  ;;  %v4021_v21 = vld [vmem:[%s3116_s19 + $0xcc] sm:$0xff]  }
 0x127   : > { %v1896_v18 = vpop.permute.xlu1 %1895  ;;  %v1742_v3 = vshll.u32 %v4021_v21, 16  ;;  %v1699_v20 = vshll.u32 %v1554_v29, 16 }
 0x128   : > { %v2160_v6 = vsel %vm2142_vm10, %v2127_v1, %v1896_v18  ;;  %v1776_v56 = vpop.permute.xlu0 %1775  ;;  %v3028_v18 = vld [vmem:[%s3116_s19 + $0x9c] sm:$0xf0] }
 0x129   : > { %2625 = vmatmul.msk.bf16.vlgmr.msra.gmra.mxu2 %vm2191_vm11, %v2160_v6  ;;  %v2135_v23 = vsel %vm2109_vm9, %v2102_v61, %v1776_v56  ;;  %v1354_v6 = vsel %vm806_vm1, %v1352_v4, %v1353_v8  ;;  %v2012_v61 = vsel %vm2010_vm6, %v3652_v11, %v3930_v46  ;;  %v2524_v46 = vld [vmem:[%s3116_s19 + $0x68] sm:$0x1]  ;;  %v3030_v63 = vor.u32 %v3029_v40, %v3028_v18 }
 0x12a   : > { %v2168_v51 = vsel %vm2142_vm10, %v2135_v23, %v3915_v7  ;;  %v1838_v7 = vrot.slane %v3955_v27, 1  ;;  %v1235_v27 = vshll.u32 %v4012_v52, 16  ;;  %v1022_v12 = vunpack.c.l.b16 %v2524_v46  ;;  %v2870_v46 = vld [vmem:[%s3116_s19 + $0x60] sm:$0xe] }
 0x12b   : > { %2629 = vmatmul.msk.bf16.vlgmr.msra.gmra.mxu3 %vm2191_vm11, %v2168_v51  ;;  %v1864_v58 = vrot.slane %v3030_v63, 1  ;;  %v1865_v18 = vrot.slane %v1554_v29, 1  ;;  %v2863_v29 = vld [vmem:[%s3116_s19 + $0x30] sm:$0xf0] }
 0x12c   : > { %1755 = vrot.lane.b32.xlu2 %v1594_v14, %s3069_s25  ;;  %v1839_v42 = vsel %vm806_vm1, %v1837_v0, %v1838_v7  ;;  %v1237_v14 = vrot.slane %v1235_v27, 1  ;;  %v1694_v7 = vshll.u32 %v4028_v34, 16  ;;  %v1038_v24 = vpack.c.b16 %v1022_v12, %v1022_v12  ;;  %v2864_v12 = vld [vmem:[%s3116_s19 + $0x30] sm:$0xe] }
 0x12d   : > { %1491 = vrot.lane.b32.xlu1 %v2831_v22, %s3070_s26  ;;  %v1866_v40 = vsel %vm806_vm1, %v1864_v58, %v1865_v18 }
 0x12e   : > { %v4007_v26 = vpop.permute.xlu2 %1385  ;;  %1483 = vrot.lane.b32.xlu0 %v3949_v37, %s3070_s26  ;;  %v4024_v37 = vld [vmem:[%s3116_s19 + $0xcc] sm:$0xf0]  ;;  %v1238_v23 = vsel %vm533_vm0, %v3907_v48, %v1237_v14  ;;  %v1692_v14 = vshrl.u32 %v4028_v34, 16  ;;  %v1139_v38 = vshll.u32 %v1038_v24, 16 }
 0x12f   : > { %v1368_v53 = vpop.permute.xlu1 %1367  ;;  %v3033_v54 = vor.u32 %v3032_v36, %v4024_v37  ;;  %v1877_v37 = vrot.slane %v4058_v59, 1 }
 0x130   : > { %v1248_v22 = vpop.permute.xlu0 %1247  ;;  %v2045_v51 = vsel %vm2043_vm7, %v2012_v61, %v1368_v53  ;;  %v2520_v53 = vld [vmem:[%s3116_s19 + $0x38] sm:$0x1] }
 0x131   : > { %v2020_v11 = vsel %vm2010_vm6, %v3818_v5, %v1248_v22  ;;  %v1365_v5 = vrot.slane %v4012_v52, 1  ;;  %v1744_v52 = vrot.slane %v1742_v3, 1  ;;  %v1018_v4 = vunpack.c.l.b16 %v2520_v53 }
 0x132   : > { %v1876_v53 = vrot.slane %v3033_v54, 1 }
 0x133   : > { %v1366_v8 = vsel %vm806_vm1, %v1364_v57, %v1365_v5  ;;  %v4107_v57 = vld [vmem:[%s3116_s19 + $0x6c] sm:$0xff]  }
 0x134   : > { %1891 = vrot.lane.b32.xlu2 %v1851_v45, %s3071_s27  ;;  %v2053_v45 = vsel %vm2043_vm7, %v2020_v11, %v3939_v49  ;;  %v2869_v11 = vld [vmem:[%s3116_s19 + $0x60] sm:$0xf0]  ;;  %v4323_v5 = vld [vmem:[#allocation3_spill] sm:$0xff] }
 0x135   : > { %1883 = vrot.lane.b32.xlu1 %v1839_v42, %s3071_s27 }
 0x136   : > { %v4032_v1 = vpop.permute.xlu2 %1505  ;;  %1763 = vrot.lane.b32.xlu0 %v1642_v25, %s3069_s25  ;;  %v1747_v25 = vshll.u32 %v4058_v59, 16 }
 0x137   : > { %v1488_v41 = vpop.permute.xlu1 %1487 }
 0x138   : > { %v1480_v56 = vpop.permute.xlu0 %1479  ;;  %v2086_v22 = vsel %vm2076_vm8, %v2053_v45, %v1488_v41  ;;  %v1696_v41 = vrot.slane %v1694_v7, 1  ;;  %v2584_v7 = vld [vmem:[%s3116_s19 + $0x44] sm:$0x1]  ;;  %v2871_v45 = vor.u32 %v2870_v46, %v2869_v11 }
 0x139   : > { %v2078_v31 = vsel %vm2076_vm8, %v2045_v51, %v1480_v56  ;;  %v4096_v51 = vld [vmem:[%s3116_s19 + $0x3c] sm:$0xff]  }
 0x13a   : > { %v2111_v0 = vsel %vm2109_vm9, %v2078_v31, %v3960_v32  ;;  %v1740_v32 = vshrl.u32 %v4021_v21, 16  ;;  %v1697_v56 = vor.u32 %v1696_v41, %v1692_v14  ;;  %v4099_v31 = vld [vmem:[%s3116_s19 + $0x3c] sm:$0xf0]  ;;  %v1598_v14 = vshll.u32 %v4096_v51, 16 }
 0x13c   : > { %1389 = vrot.lane.b32.xlu2 %v1354_v6, %s3068_s24  ;;  %v1749_v6 = vrot.slane %v1747_v25, 1  ;;  %v1878_v25 = vsel %vm806_vm1, %v1876_v53, %v1877_v37 }
 0x13d   : > { %1269 = vrot.lane.b32.xlu1 %v1238_v23, %s3067_s23 }
 0x13e   : > { %v4055_v48 = vpop.permute.xlu2 %1897  ;;  %1261 = vrot.lane.b32.xlu0 %v1190_v15, %s3067_s23  ;;  %v1141_v15 = vrot.slane %v1139_v38, 1  ;;  %v1596_v38 = vshrl.u32 %v4096_v51, 16 }
 0x13f   : > { %v1880_v55 = vpop.permute.xlu1 %1879 }
 0x140   : > { %v2144_v10 = vsel %vm2142_vm10, %v2111_v0, %v1880_v55  ;;  %v1760_v42 = vpop.permute.xlu0 %1759  ;;  %v4110_v55 = vld [vmem:[%s3116_s19 + $0x6c] sm:$0xf0]  ;;  %v1142_v63 = vsel %vm533_vm0, %v4323_v5, %v1141_v15 }
 0x141   : > { %2617 = vmatmul.msk.bf16.vlgmr.msra.gmra.mxu0 %vm2191_vm11, %v2144_v10  ;;  %v2119_v27 = vsel %vm2109_vm9, %v2086_v22, %v1760_v42  ;;  %v4324_v42 = vld [vmem:[#allocation2_spill] sm:$0xff] }
 0x142   : > { %v2152_v49 = vsel %vm2142_vm10, %v2119_v27, %v3984_v50  ;;  %v1745_v50 = vor.u32 %v1744_v52, %v1740_v32  ;;  %v1530_v27 = vunpack.c.l.b16 %v2584_v7  ;;  %v2588_v52 = vld [vmem:[%s3116_s19 + $0x74] sm:$0x1] }
 0x143   : > { %2621 = vmatmul.msk.bf16.vlgmr.msra.gmra.mxu1 %vm2191_vm11, %v2152_v49  ;;  %v2865_v49 = vor.u32 %v2864_v12, %v2863_v29  ;;  %v1534_v58 = vunpack.c.l.b16 %v2588_v52 }
 0x144   : > { %1509 = vrot.lane.b32.xlu2 %v4021_v21, %s3070_s26  ;;  %v4084_v21 = vpack.c.b16 %v1018_v4, %v1018_v4  ;;  %v1750_v35 = vsel %vm533_vm0, %v1745_v50, %v1749_v6  ;;  %v1340_v4 = vrot.slane %v2871_v45, 1  ;;  %v1546_v18 = vpack.c.b16 %v1530_v27, %v1530_v27 }
 0x145   : > { %1501 = vrot.lane.b32.xlu1 %v4028_v34, %s3070_s26  ;;  %v1701_v34 = vrot.slane %v1699_v20, 1  ;;  %v1646_v20 = vshll.u32 %v4107_v57, 16  ;;  %v1328_v50 = vrot.slane %v2865_v49, 1 }
 0x146   : > { %1397 = vrot.lane.b32.xlu0 %v1366_v8, %s3068_s24  ;;  %v4090_v61 = vpop.permute.xlu2 %1369  ;;  %v1091_v60 = vshll.u32 %v4084_v21, 16  ;;  %v1341_v8 = vrot.slane %v1038_v24, 1  ;;  %v1329_v6 = vrot.slane %v4084_v21, 1  ;;  %v1644_v21 = vshrl.u32 %v4107_v57, 16 }
 0x147   : > { %v4087_v28 = vpop.permute.xlu1 %1265  ;;  %v1702_v44 = vsel %vm533_vm0, %v1697_v56, %v1701_v34  ;;  %v1550_v56 = vpack.c.b16 %v1534_v58, %v1534_v58 }
 0x148   : > { %v1258_v23 = vpop.permute.xlu0 %1257  ;;  %v1093_v3 = vrot.slane %v1091_v60, 1  ;;  %v1342_v24 = vsel %vm806_vm1, %v1340_v4, %v1341_v8  ;;  %v2038_v54 = vsel %vm2010_vm6, %v3903_v43, %v4087_v28  ;;  %v1330_v46 = vsel %vm806_vm1, %v1328_v50, %v1329_v6 }
 0x149   : > { %v2030_v59 = vsel %vm2010_vm6, %v3745_v13, %v1258_v23  ;;  %v1600_v23 = vrot.slane %v1598_v14, 1  ;;  %v1651_v15 = vshll.u32 %v1550_v56, 16 }
 0x14a   : > { %v1094_v32 = vsel %vm533_vm0, %v4324_v42, %v1093_v3  ;;  %v2063_v36 = vsel %vm2043_vm7, %v2030_v59, %v4007_v26  ;;  %v3035_v26 = vld [vmem:[%s3116_s19 + $0x6c] sm:$0xe]  ;;  %v2047_v59 = vsel %vm2043_vm7, %v3925_v39, %v4090_v61 }
 0x14b   : > { %v1601_v7 = vor.u32 %v1600_v23, %v1596_v38  ;;  %v3036_v29 = vor.u32 %v3035_v26, %v4110_v55 }
 0x14c   : > { %1901 = vrot.lane.b32.xlu2 %v1866_v40, %s3071_s27 }
 0x14d   : > { %1781 = vrot.lane.b32.xlu1 %v1750_v35, %s3069_s25  ;;  %v1603_v35 = vshll.u32 %v1546_v18, 16  ;;  %v1852_v42 = vrot.slane %v3036_v29, 1 }
 0x14e   : > { %1773 = vrot.lane.b32.xlu0 %v1702_v44, %s3069_s25  ;;  %v4119_v22 = vpop.permute.xlu2 %1489  ;;  %v1648_v44 = vrot.slane %v1646_v20, 1 }
 0x14f   : > { %v1498_v0 = vpop.permute.xlu1 %1497  ;;  %v1605_v5 = vrot.slane %v1603_v35, 1 }
 0x150   : > { %v1394_v10 = vpop.permute.xlu0 %1393  ;;  %v2096_v13 = vsel %vm2076_vm8, %v2063_v36, %v1498_v0  ;;  %v1649_v0 = vor.u32 %v1648_v44, %v1644_v21 }
 0x151   : > { %v2071_v3 = vsel %vm2043_vm7, %v2038_v54, %v1394_v10  ;;  %v1606_v10 = vsel %vm533_vm0, %v1601_v7, %v1605_v5 }
 0x152   : > { %v2104_v43 = vsel %vm2076_vm8, %v2071_v3, %v4032_v1 }
 0x154   : > { %1253 = vrot.lane.b32.xlu2 %v1142_v63, %s3067_s23 }
 0x155   : > { %1245 = vrot.lane.b32.xlu1 %v1094_v32, %s3067_s23  ;;  %v1853_v32 = vrot.slane %v1550_v56, 1 }
 0x156   : > { %1909 = vrot.lane.b32.xlu0 %v1878_v25, %s3071_s27  ;;  %v1882_v11 = vpop.permute.xlu2 %1881  ;;  %v1841_v25 = vrot.slane %v1546_v18, 1 }
 0x157   : > { %v1778_v41 = vpop.permute.xlu1 %1777  ;;  %v1854_v55 = vsel %vm806_vm1, %v1852_v42, %v1853_v32 }
 0x158   : > { %v1770_v40 = vpop.permute.xlu0 %1769  ;;  %v2137_v53 = vsel %vm2109_vm9, %v2104_v43, %v1778_v41 }
 0x159   : > { %v2129_v34 = vsel %vm2109_vm9, %v2096_v13, %v1770_v40 }
 0x15a   : > { %v2162_v60 = vsel %vm2142_vm10, %v2129_v34, %v4055_v48  ;;  %v3038_v48 = vld [vmem:[%s3116_s19 + $0x3c] sm:$0xe] }
 0x15b   : > { %2626 = vmatmul.msk.bf16.gmra.mxu2 %vm2191_vm11, %v2162_v60  ;;  %v3039_v12 = vor.u32 %v3038_v48, %v4099_v31 }
 0x15c   : > { %1485 = vrot.lane.b32.xlu2 %v4096_v51, %s3070_s26  ;;  %v1653_v51 = vrot.slane %v1651_v15, 1 }
 0x15d   : > { %1381 = vrot.lane.b32.xlu1 %v1342_v24, %s3068_s24  ;;  %v1840_v52 = vrot.slane %v3039_v12, 1 }
 0x15e   : > { %1373 = vrot.lane.b32.xlu0 %v1330_v46, %s3068_s24  ;;  %v1654_v28 = vsel %vm533_vm0, %v1649_v0, %v1653_v51  ;;  %v1268_v1 = vpop.permute.xlu2 %1267 }
 0x15f   : > { %v1250_v63 = vpop.permute.xlu1 %1249  ;;  %v1842_v49 = vsel %vm806_vm1, %v1840_v52, %v1841_v25  ;;  %v2040_v38 = vsel %vm2010_vm6, %v3898_v47, %v1268_v1  ;;  %v4217_v52 = vld [vmem:[%s4312_s2] ss:$0 sm:$0xff] }
 0x160   : > { %v1906_v37 = vpop.permute.xlu0 %1905  ;;  %v2022_v41 = vsel %vm2010_vm6, %v3813_v17, %v1250_v63 }
 0x161   : > { %v2170_v45 = vsel %vm2142_vm10, %v2137_v53, %v1906_v37 }
 0x162   : > { %2630 = vmatmul.msk.bf16.gmra.mxu3 %vm2191_vm11, %v2170_v45 }
 0x164   : > { %1765 = vrot.lane.b32.xlu2 %v1654_v28, %s3069_s25 }
 0x165   : > { %1757 = vrot.lane.b32.xlu1 %v1606_v10, %s3069_s25 }
 0x166   : > { %1493 = vrot.lane.b32.xlu0 %v4107_v57, %s3070_s26  ;;  %v1500_v8 = vpop.permute.xlu2 %1499 }
 0x167   : > { %v1482_v27 = vpop.permute.xlu1 %1481 }
 0x168   : > { %v1378_v4 = vpop.permute.xlu0 %1377  ;;  %v2080_v57 = vsel %vm2076_vm8, %v2047_v59, %v1482_v27 }
 0x169   : > { %v2055_v20 = vsel %vm2043_vm7, %v2022_v41, %v1378_v4 }
 0x16a   : > { %v2088_v50 = vsel %vm2076_vm8, %v2055_v20, %v4119_v22 }
 0x16d   : > { %1893 = vrot.lane.b32.xlu1 %v1854_v55, %s3071_s27 }
 0x16e   : > { %1885 = vrot.lane.b32.xlu0 %v1842_v49, %s3071_s27  ;;  %v1780_v6 = vpop.permute.xlu2 %1779 }
 0x16f   : > { %v1762_v31 = vpop.permute.xlu1 %1761 }
 0x170   : > { %v1754_v58 = vpop.permute.xlu0 %1753  ;;  %v2121_v39 = vsel %vm2109_vm9, %v2088_v50, %v1762_v31 }
 0x171   : > { %v2113_v18 = vsel %vm2109_vm9, %v2080_v57, %v1754_v58 }
 0x172   : > { %v2146_v14 = vsel %vm2142_vm10, %v2113_v18, %v1882_v11 }
 0x173   : > { %2618 = vmatmul.msk.bf16.gmra.mxu0 %vm2191_vm11, %v2146_v14 }
 0x176   : > { %v1244_v56 = vpop.permute.xlu2 %1243 }
 0x177   : > { %v1260_v36 = vpop.permute.xlu1 %1259  ;;  %v2016_v7 = vsel %vm2010_vm6, %v3784_v19, %v1244_v56 }
 0x178   : > { %v1890_v61 = vpop.permute.xlu0 %1889  ;;  %v2032_v22 = vsel %vm2010_vm6, %v3873_v30, %v1260_v36 }
 0x179   : > { %v2154_v13 = vsel %vm2142_vm10, %v2121_v39, %v1890_v61 }
 0x17a   : > { %2622 = vmatmul.msk.bf16.gmra.mxu1 %vm2191_vm11, %v2154_v13 }
 0x17e   : > { %v1380_v26 = vpop.permute.xlu2 %1379 }
 0x17f   : > { %v1396_v40 = vpop.permute.xlu1 %1395 }
 0x180   : > { %v1388_v24 = vpop.permute.xlu0 %1387  ;;  %v2073_v23 = vsel %vm2043_vm7, %v2040_v38, %v1396_v40 }
 0x181   : > { %v2065_v60 = vsel %vm2043_vm7, %v2032_v22, %v1388_v24 }
 0x182   : > { %v2098_v15 = vsel %vm2076_vm8, %v2065_v60, %v1500_v8 }
 0x186   : > { %v1756_v3 = vpop.permute.xlu2 %1755 }
 0x187   : > { %v1772_v17 = vpop.permute.xlu1 %1771 }
 0x188   : > { %v1508_v34 = vpop.permute.xlu0 %1507  ;;  %v2131_v11 = vsel %vm2109_vm9, %v2098_v15, %v1772_v17 }
 0x189   : > { %v2106_v35 = vsel %vm2076_vm8, %v2073_v23, %v1508_v34 }
 0x18a   : > { %v2139_v44 = vsel %vm2109_vm9, %v2106_v35, %v1780_v6 }
 0x18e   : > { %v1892_v5 = vpop.permute.xlu2 %1891 }
 0x18f   : > { %v1908_v21 = vpop.permute.xlu1 %1907 }
 0x190   : > { %v2172_v54 = vsel %vm2142_vm10, %v2139_v44, %v1908_v21  ;;  %v1900_v47 = vpop.permute.xlu0 %1899 }
 0x191   : > { %2631 = vmatmul.msk.bf16.gmra.mxu3 %vm2191_vm11, %v2172_v54  ;;  %v2164_v46 = vsel %vm2142_vm10, %v2131_v11, %v1900_v47 }
 0x192   : > { %2627 = vmatmul.msk.bf16.gmra.mxu2 %vm2191_vm11, %v2164_v46 }
 0x196   : > { %v1390_v42 = vpop.permute.xlu2 %1389 }
 0x197   : > { %v1372_v30 = vpop.permute.xlu1 %1371 }
 0x198   : > { %v1252_v48 = vpop.permute.xlu0 %1251  ;;  %v2049_v63 = vsel %vm2043_vm7, %v2016_v7, %v1372_v30 }
 0x199   : > { %v2024_v28 = vsel %vm2010_vm6, %v3712_v33, %v1252_v48 }
 0x19a   : > { %v2057_v45 = vsel %vm2043_vm7, %v2024_v28, %v1380_v26 }
 0x19e   : > { %v1510_v31 = vpop.permute.xlu2 %1509 }
 0x19f   : > { %v1492_v0 = vpop.permute.xlu1 %1491 }
 0x1a0   : > { %v1484_v51 = vpop.permute.xlu0 %1483  ;;  %v2090_v29 = vsel %vm2076_vm8, %v2057_v45, %v1492_v0 }
 0x1a1   : > { %v2082_v43 = vsel %vm2076_vm8, %v2049_v63, %v1484_v51 }
 0x1a2   : > { %v2115_v37 = vsel %vm2109_vm9, %v2082_v43, %v1756_v3 }
 0x1a6   : > { %v1902_v39 = vpop.permute.xlu2 %1901 }
 0x1a7   : > { %v1884_v53 = vpop.permute.xlu1 %1883 }
 0x1a8   : > { %v2148_v10 = vsel %vm2142_vm10, %v2115_v37, %v1884_v53  ;;  %v1764_v12 = vpop.permute.xlu0 %1763 }
 0x1a9   : > { %2619 = vmatmul.msk.bf16.gmra.mxu0 %vm2191_vm11, %v2148_v10  ;;  %v2123_v19 = vsel %vm2109_vm9, %v2090_v29, %v1764_v12 }
 0x1aa   : > { %v2156_v1 = vsel %vm2142_vm10, %v2123_v19, %v1892_v5 }
 0x1ab   : > { %2623 = vmatmul.msk.bf16.gmra.mxu1 %vm2191_vm11, %v2156_v1 }
 0x1ac   : > { %v2277_v33 = vpop.f32.mrf.mxu2 }
 0x1ad   : > { %v2278_v55 = vadd.f32 %v4217_v52, %v2277_v33 }
 0x1ae   : > { %v2297_v32 = vpop.f32.mrf.mxu3 }
 0x1af   : > { %v1270_v27 = vpop.permute.xlu1 %1269  ;;  %v2298_v58 = vadd.f32 %v4217_v52, %v2297_v32 }
 0x1b0   : > { %v1262_v25 = vpop.permute.xlu0 %1261  ;;  %v2042_v17 = vsel %vm2010_vm6, %v3803_v16, %v1270_v27  ;;  %v1254_v16 = vpop.permute.xlu2 %1253 }
 0x1b1   : > { %v2034_v20 = vsel %vm2010_vm6, %v3867_v2, %v1262_v25  ;;  %v2026_v51 = vsel %vm2010_vm6, %v3847_v9, %v1254_v16 }
 0x1b2   : > { %v2067_v61 = vsel %vm2043_vm7, %v2034_v20, %v1390_v42 }
 0x1b4   : > { %v2279_v4 = vpop.f32.mrf.mxu2 }
 0x1b5   : > { %v2280_v49 = vadd.f32 %v4217_v52, %v2279_v4 }
 0x1b6   : > { %v2299_v8 = vpop.f32.mrf.mxu3 }
 0x1b7   : > { %v2776_v59 = vpack.c.bf16 %v2280_v49, %v2278_v55  ;;  %v1502_v57 = vpop.permute.xlu1 %1501  ;;  %v2300_v18 = vadd.f32 %v4217_v52, %v2299_v8 }
 0x1b8   : > { %v1398_v14 = vpop.permute.xlu0 %1397  ;;  %v2100_v6 = vsel %vm2076_vm8, %v2067_v61, %v1502_v57  ;;  %v1486_v3 = vpop.permute.xlu2 %1485 }
 0x1b9   : > { %2915 = vst [vmem:[%s4225_s10 + $0x40] sm:$0xff] %v2776_v59   ;;  %v2796_v41 = vpack.c.bf16 %v2300_v18, %v2298_v58  ;;  %v2075_v2 = vsel %vm2043_vm7, %v2042_v17, %v1398_v14 }
 0x1ba   : > { %v2108_v35 = vsel %vm2076_vm8, %v2075_v2, %v1510_v31 }
 0x1bb   : > { %2919 = vst [vmem:[%s4225_s10 + $0x60] sm:$0xff] %v2796_v41  }
 0x1be   : > { %v2237_v36 = vpop.f32.mrf.mxu0 }
 0x1bf   : > { %v1782_v50 = vpop.permute.xlu1 %1781  ;;  %v2238_v38 = vadd.f32 %v4217_v52, %v2237_v36 }
 0x1c0   : > { %v2257_v13 = vpop.f32.mrf.mxu1  ;;  %v1774_v40 = vpop.permute.xlu0 %1773  ;;  %v2141_v60 = vsel %vm2109_vm9, %v2108_v35, %v1782_v50 }
 0x1c1   : > { %v2133_v24 = vsel %vm2109_vm9, %v2100_v6, %v1774_v40  ;;  %v2258_v15 = vadd.f32 %v4217_v52, %v2257_v13  ;;  %v1766_v43 = vpop.permute.xlu2 %1765 }
 0x1c2   : > { %v2166_v56 = vsel %vm2142_vm10, %v2133_v24, %v1902_v39 }
 0x1c3   : > { %2628 = vmatmul.msk.bf16.gmra.mxu2 %vm2191_vm11, %v2166_v56 }
 0x1c6   : > { %v2239_v34 = vpop.f32.mrf.mxu0 }
 0x1c7   : > { %v2240_v23 = vadd.f32 %v4217_v52, %v2239_v34  ;;  %v1246_v22 = vpop.permute.xlu1 %1245 }
 0x1c8   : > { %v2259_v21 = vpop.f32.mrf.mxu1  ;;  %v1910_v44 = vpop.permute.xlu0 %1909  ;;  %v2018_v5 = vsel %vm2010_vm6, %v3686_v62, %v1246_v22 }
 0x1c9   : > { %v2736_v26 = vpack.c.bf16 %v2240_v23, %v2238_v38  ;;  %v2260_v54 = vadd.f32 %v4217_v52, %v2259_v21  ;;  %v2174_v11 = vsel %vm2142_vm10, %v2141_v60, %v1910_v44 }
 0x1ca   : > { %2632 = vmatmul.msk.bf16.gmra.mxu3 %vm2191_vm11, %v2174_v11 }
 0x1cb   : > { %2737 = vst [vmem:[%s4225_s10] sm:$0xff] %v2736_v26   ;;  %v2756_v47 = vpack.c.bf16 %v2260_v54, %v2258_v15 }
 0x1cd   : > { %2911 = vst [vmem:[%s4225_s10 + $0x20] sm:$0xff] %v2756_v47  }
 0x1cf   : > { %v1382_v46 = vpop.permute.xlu1 %1381 }
 0x1d0   : > { %v1374_v30 = vpop.permute.xlu0 %1373  ;;  %v2059_v7 = vsel %vm2043_vm7, %v2026_v51, %v1382_v46 }
 0x1d1   : > { %v2051_v28 = vsel %vm2043_vm7, %v2018_v5, %v1374_v30 }
 0x1d2   : > { %v2084_v10 = vsel %vm2076_vm8, %v2051_v28, %v1486_v3 }
 0x1d7   : > { %v1758_v48 = vpop.permute.xlu1 %1757 }
 0x1d8   : > { %v1494_v0 = vpop.permute.xlu0 %1493  ;;  %v2117_v9 = vsel %vm2109_vm9, %v2084_v10, %v1758_v48 }
 0x1d9   : > { %v2092_v63 = vsel %vm2076_vm8, %v2059_v7, %v1494_v0 }
 0x1da   : > { %v2125_v53 = vsel %vm2109_vm9, %v2092_v63, %v1766_v43 }
 0x1de   : > { %v2282_v37 = vpop.f32.mrf.mxu2 }
 0x1df   : > { %v1894_v45 = vpop.permute.xlu1 %1893  ;;  %v2283_v42 = vadd.f32 %v4217_v52, %v2282_v37 }
 0x1e0   : > { %v2158_v29 = vsel %vm2142_vm10, %v2125_v53, %v1894_v45  ;;  %v1886_v12 = vpop.permute.xlu0 %1885 }
 0x1e1   : > { %2624 = vmatmul.msk.bf16.gmra.mxu1 %vm2191_vm11, %v2158_v29  ;;  %v2150_v62 = vsel %vm2142_vm10, %v2117_v9, %v1886_v12 }
 0x1e2   : > { %2620 = vmatmul.msk.bf16.gmra.mxu0 %vm2191_vm11, %v2150_v62 }
 0x1e5   : > { %v2302_v19 = vpop.f32.mrf.mxu3 }
 0x1e6   : > { %v2284_v1 = vpop.f32.mrf.mxu2  ;;  %v2303_v25 = vadd.f32 %v4217_v52, %v2302_v19 }
 0x1e7   : > { %v2285_v33 = vadd.f32 %v4217_v52, %v2284_v1 }
 0x1e9   : > { %v2781_v32 = vpack.c.bf16 %v2285_v33, %v2283_v42 }
 0x1eb   : > { %2916 = vst [vmem:[%s4225_s10 + $0x48] sm:$0xff] %v2781_v32  }
 0x1ed   : > { %v2304_v27 = vpop.f32.mrf.mxu3 }
 0x1ee   : > { %v2305_v4 = vadd.f32 %v4217_v52, %v2304_v27 }
 0x1f0   : > { %v2801_v55 = vpack.c.bf16 %v2305_v4, %v2303_v25  ;;  %v2242_v49 = vpop.f32.mrf.mxu0 }
 0x1f1   : > { %v2243_v8 = vadd.f32 %v4217_v52, %v2242_v49 }
 0x1f2   : > { %2920 = vst [vmem:[%s4225_s10 + $0x68] sm:$0xff] %v2801_v55  }
 0x1f7   : > { %v2262_v31 = vpop.f32.mrf.mxu1 }
 0x1f8   : > { %v2244_v59 = vpop.f32.mrf.mxu0  ;;  %v2263_v14 = vadd.f32 %v4217_v52, %v2262_v31 }
 0x1f9   : > { %v2245_v57 = vadd.f32 %v4217_v52, %v2244_v59 }
 0x1fb   : > { %v2741_v58 = vpack.c.bf16 %v2245_v57, %v2243_v8 }
 0x1fd   : > { %2908 = vst [vmem:[%s4225_s10 + $0x8] sm:$0xff] %v2741_v58  }
 0x1ff   : > { %v2264_v18 = vpop.f32.mrf.mxu1 }
 0x200   : > { %v2265_v41 = vadd.f32 %v4217_v52, %v2264_v18 }
 0x202   : > { %v2761_v20 = vpack.c.bf16 %v2265_v41, %v2263_v14 }
 0x204   : > { %2912 = vst [vmem:[%s4225_s10 + $0x28] sm:$0xff] %v2761_v20  }
 0x214   : > { %v2307_v36 = vpop.f32.mrf.mxu3 }
 0x215   : > { %v2287_v50 = vpop.f32.mrf.mxu2  ;;  %v2308_v61 = vadd.f32 %v4217_v52, %v2307_v36 }
 0x216   : > { %v2288_v40 = vadd.f32 %v4217_v52, %v2287_v50 }
 0x21c   : > { %v2309_v39 = vpop.f32.mrf.mxu3 }
 0x21d   : > { %v2310_v6 = vadd.f32 %v4217_v52, %v2309_v39  ;;  %v2289_v13 = vpop.f32.mrf.mxu2 }
 0x21e   : > { %v2290_v24 = vadd.f32 %v4217_v52, %v2289_v13 }
 0x21f   : > { %v2806_v56 = vpack.c.bf16 %v2310_v6, %v2308_v61 }
 0x220   : > { %v2786_v17 = vpack.c.bf16 %v2290_v24, %v2288_v40 }
 0x221   : > { %2921 = vst [vmem:[%s4225_s10 + $0x70] sm:$0xff] %v2806_v56  }
 0x222   : > { %2917 = vst [vmem:[%s4225_s10 + $0x50] sm:$0xff] %v2786_v17  }
 0x226   : > { %v2247_v2 = vpop.f32.mrf.mxu0 }
 0x227   : > { %v2248_v23 = vadd.f32 %v4217_v52, %v2247_v2 }
 0x228   : > { %v2267_v34 = vpop.f32.mrf.mxu1 }
 0x229   : > { %v2268_v26 = vadd.f32 %v4217_v52, %v2267_v34 }
 0x22e   : > { %v2249_v38 = vpop.f32.mrf.mxu0 }
 0x22f   : > { %v2250_v22 = vadd.f32 %v4217_v52, %v2249_v38 }
 0x230   : > { %v2269_v60 = vpop.f32.mrf.mxu1 }
 0x231   : > { %v2746_v35 = vpack.c.bf16 %v2250_v22, %v2248_v23  ;;  %v2270_v21 = vadd.f32 %v4217_v52, %v2269_v60 }
 0x233   : > { %2909 = vst [vmem:[%s4225_s10 + $0x10] sm:$0xff] %v2746_v35   ;;  %v2766_v44 = vpack.c.bf16 %v2270_v21, %v2268_v26 }
 0x235   : > { %2913 = vst [vmem:[%s4225_s10 + $0x30] sm:$0xff] %v2766_v44  }
 0x246   : > { %v2292_v16 = vpop.f32.mrf.mxu2 }
 0x247   : > { %v2293_v11 = vadd.f32 %v4217_v52, %v2292_v16 }
 0x24d   : > { %v2312_v15 = vpop.f32.mrf.mxu3 }
 0x24e   : > { %v2294_v54 = vpop.f32.mrf.mxu2  ;;  %v2313_v3 = vadd.f32 %v4217_v52, %v2312_v15 }
 0x24f   : > { %v2295_v47 = vadd.f32 %v4217_v52, %v2294_v54 }
 0x251   : > { %v2791_v46 = vpack.c.bf16 %v2295_v47, %v2293_v11 }
 0x253   : > { %2918 = vst [vmem:[%s4225_s10 + $0x58] sm:$0xff] %v2791_v46  }
 0x255   : > { %v2314_v30 = vpop.f32.mrf.mxu3 }
 0x256   : > { %v2315_v48 = vadd.f32 %v4217_v52, %v2314_v30 }
 0x258   : > { %v2811_v0 = vpack.c.bf16 %v2315_v48, %v2313_v3 }
 0x25a   : > { %2922 = vst [vmem:[%s4225_s10 + $0x78] sm:$0xff] %v2811_v0  }
 0x25e   : > { %v2272_v51 = vpop.f32.mrf.mxu1 }
 0x25f   : > { %v2252_v7 = vpop.f32.mrf.mxu0  ;;  %v2273_v63 = vadd.f32 %v4217_v52, %v2272_v51 }
 0x260   : > { %v2253_v53 = vadd.f32 %v4217_v52, %v2252_v7 }
 0x266   : > { %v2274_v5 = vpop.f32.mrf.mxu1 }
 0x267   : > { %v2275_v43 = vadd.f32 %v4217_v52, %v2274_v5  ;;  %v2254_v28 = vpop.f32.mrf.mxu0 }
 0x268   : > { %v2255_v37 = vadd.f32 %v4217_v52, %v2254_v28 }
 0x269   : > { %v2771_v45 = vpack.c.bf16 %v2275_v43, %v2273_v63 }
 0x26a   : > { %v2751_v10 = vpack.c.bf16 %v2255_v37, %v2253_v53 }
 0x26b   : > { %2914 = vst [vmem:[%s4225_s10 + $0x38] sm:$0xff] %v2771_v45  }
 0x26c   : > { %2910 = vst [vmem:[%s4225_s10 + $0x18] sm:$0xff] %v2751_v10  }
 0x26d PF: > { %s13_s14 = sadd.s32 1, %s3062_s14   ;;  %s4325_s12 = smov %s3058_s13 }
 0x26e   : > { %p10_p5 = scmp.ge.s32.totalorder %s13_s14, 4   ;;  %s4326_s13 = smov %s4328_s15 }
 0x270   :  { %12 = sbr.rel (!%p10_p5) target bundleno = 2 (0x2), region = 64 }

</bundles_post_ra>
